<compile_context>
chip_gen: v7x
topology: tpu7x:2x2x1
jax: 0.10.0
libtpu: 0.0.40
codegen_flags: <defaults>
</compile_context>

<pallas_src>
import functools

import jax
import jax.numpy as jnp
from jax.experimental import pallas as pl
from jax.experimental.pallas import tpu as pltpu

LN_EPS = 1e-3       # old-repo LayerNormalization eps (added to sigma)
MASK_NEG = -1e30    # large finite negative: safe for fully-masked rows


def _layer_norm_old(z, gamma, beta, d):
    """old repo: (z - mu) / (std_unbiased + eps) * a_2 + b_2  on last axis."""
    mu = jnp.mean(z, axis=-1, keepdims=True)
    zc = z - mu
    var = jnp.sum(zc * zc, axis=-1, keepdims=True) * (1.0 / (d - 1))
    inv = pl.reciprocal(jnp.sqrt(var) + LN_EPS, approx=True)
    return zc * inv * gamma + beta


def _mha_block(x_q, x_kv, bias, wq, wk, wv, wp, bp, gamma, beta,
               attn_ref, n_head, d_k, d_v):
    """Fused-head MHA on one batch element.

    x_q: (Lq, Dm) f32, x_kv: (Lk, Dm) f32, bias: (Lq, Lk) f32 additive mask.
    wq/wk: (Dm, H*Dk) bf16, wv: (Dm, H*Dv) bf16, wp: (H*Dv, Dm) bf16,
    bp/gamma/beta: (1, Dm) f32. attn_ref block: (H, 1, Lq, Lk).
    Returns layer-normed (Lq, Dm) f32.
    """
    Lq, Dm = x_q.shape
    inv_temper = 1.0 / (float(Dm) ** 0.5)   # old repo scales by sqrt(d_model)

    q_bf = x_q.astype(jnp.bfloat16)
    kv_bf = x_kv.astype(jnp.bfloat16)

    # Fused-head projections: one wide MXU matmul per Q/K/V.
    qh = jnp.dot(q_bf, wq, preferred_element_type=jnp.float32)    # (Lq, H*Dk)
    kh = jnp.dot(kv_bf, wk, preferred_element_type=jnp.float32)   # (Lk, H*Dk)
    vh = jnp.dot(kv_bf, wv, preferred_element_type=jnp.float32)   # (Lk, H*Dv)

    ctx_heads = []
    for h in range(n_head):                 # static loop; only the inherently
        q_h = qh[:, h * d_k:(h + 1) * d_k]  # per-head part stays per-head
        k_h = kh[:, h * d_k:(h + 1) * d_k]
        v_h = vh[:, h * d_v:(h + 1) * d_v]

        s = jnp.einsum('qd,kd->qk',
                       q_h.astype(jnp.bfloat16), k_h.astype(jnp.bfloat16),
                       preferred_element_type=jnp.float32) * inv_temper + bias
        m = jnp.max(s, axis=-1, keepdims=True)
        p = jnp.exp(s - m)
        attn = p * pl.reciprocal(jnp.sum(p, axis=-1, keepdims=True),
                                 approx=True)
        attn_ref[h] = attn[None].astype(attn_ref.dtype)

        ctx_heads.append(jnp.dot(attn.astype(jnp.bfloat16),
                                 v_h.astype(jnp.bfloat16),
                                 preferred_element_type=jnp.float32))

    ctx = jnp.concatenate(ctx_heads, axis=-1)               # (Lq, H*Dv)
    proj = jnp.dot(ctx.astype(jnp.bfloat16), wp,
                   preferred_element_type=jnp.float32) + bp  # (Lq, Dm)
    z = proj + x_q                                           # residual
    return _layer_norm_old(z, gamma, beta, Dm)


def decoder_layer_kernel(
        # activations (per-batch blocks)
        dec_ref, enc_ref, slf_bias_ref, enc_bias_ref,
        # self-attention params
        wq1_ref, wk1_ref, wv1_ref, wp1_ref, bp1_ref, g1_ref, be1_ref,
        # enc-dec attention params
        wq2_ref, wk2_ref, wv2_ref, wp2_ref, bp2_ref, g2_ref, be2_ref,
        # position-wise FFN params
        w1_ref, fb1_ref, w2_ref, fb2_ref, g3_ref, be3_ref,
        # outputs
        out_ref, slf_attn_ref, enc_attn_ref,
        *, n_head, d_k, d_v):
    dec_x = dec_ref[0].astype(jnp.float32)          # (Lq, Dm)
    enc_x = enc_ref[0].astype(jnp.float32)          # (Le, Dm)
    slf_bias = slf_bias_ref[0].astype(jnp.float32)  # (Lq, Lq)
    enc_bias = enc_bias_ref[0].astype(jnp.float32)  # (Lq, Le)

    # Stage 1: masked self-attention + residual + LN (stays on-chip)
    x1 = _mha_block(dec_x, dec_x, slf_bias,
                    wq1_ref[...], wk1_ref[...], wv1_ref[...], wp1_ref[...],
                    bp1_ref[...], g1_ref[...], be1_ref[...],
                    slf_attn_ref, n_head, d_k, d_v)

    # Stage 2: encoder-decoder attention + residual + LN
    x2 = _mha_block(x1, enc_x, enc_bias,
                    wq2_ref[...], wk2_ref[...], wv2_ref[...], wp2_ref[...],
                    bp2_ref[...], g2_ref[...], be2_ref[...],
                    enc_attn_ref, n_head, d_k, d_v)

    # Stage 3: position-wise FFN (Conv1d k=1 == per-position linear) + res + LN
    hdn = jnp.dot(x2.astype(jnp.bfloat16), w1_ref[...],
                  preferred_element_type=jnp.float32) + fb1_ref[...]
    hdn = jnp.maximum(hdn, 0.0)                      # ReLU
    y = jnp.dot(hdn.astype(jnp.bfloat16), w2_ref[...],
                preferred_element_type=jnp.float32) + fb2_ref[...]
    out = _layer_norm_old(y + x2, g3_ref[...], be3_ref[...], x2.shape[-1])

    out_ref[0] = out.astype(out_ref.dtype)


def _fuse_mha_params(params):
    """(H,Dm,Dk)/(H,Dm,Dv) per-head weights -> fused (Dm,H*Dk)/(Dm,H*Dv) bf16."""
    wq, wk, wv, wp, bp, gamma, beta = params
    H, Dm, Dk = wq.shape
    Dv = wv.shape[2]
    wq_f = jnp.transpose(wq, (1, 0, 2)).reshape(Dm, H * Dk).astype(jnp.bfloat16)
    wk_f = jnp.transpose(wk, (1, 0, 2)).reshape(Dm, H * Dk).astype(jnp.bfloat16)
    wv_f = jnp.transpose(wv, (1, 0, 2)).reshape(Dm, H * Dv).astype(jnp.bfloat16)
    wp_f = wp.astype(jnp.bfloat16)
    return (wq_f, wk_f, wv_f, wp_f,
            bp.reshape(1, Dm).astype(jnp.float32),
            gamma.reshape(1, Dm).astype(jnp.float32),
            beta.reshape(1, Dm).astype(jnp.float32))


def decoder_layer(dec_input, enc_output, slf_attn_mask, dec_enc_attn_mask,
                  slf_params, enc_params, ffn_params):
    B, Lq, Dm = dec_input.shape
    Le = enc_output.shape[1]
    H, _, Dk = slf_params[0].shape
    Dv = slf_params[2].shape[2]
    F = ffn_params[0].shape[1]

    # Mask -> additive bf16 bias (halves mask traffic, no in-kernel compare,
    # finite negative avoids NaN on fully-masked rows).
    slf_bias = jnp.where(slf_attn_mask != 0, MASK_NEG, 0.0).astype(jnp.bfloat16)
    enc_bias = jnp.where(dec_enc_attn_mask != 0, MASK_NEG, 0.0).astype(jnp.bfloat16)

    slf_w = _fuse_mha_params(slf_params)
    enc_w = _fuse_mha_params(enc_params)
    w1, b1, w2, b2, g3, b3 = ffn_params
    ffn_w = (w1.astype(jnp.bfloat16),
             b1.reshape(1, F).astype(jnp.float32),
             w2.astype(jnp.bfloat16),
             b2.reshape(1, Dm).astype(jnp.float32),
             g3.reshape(1, Dm).astype(jnp.float32),
             b3.reshape(1, Dm).astype(jnp.float32))

    def act_spec(shape):
        nrest = len(shape) - 1
        return pl.BlockSpec((1,) + tuple(shape[1:]),
                            lambda b, _n=nrest: (b,) + (0,) * _n)

    def const_spec(shape):
        n = len(shape)
        return pl.BlockSpec(tuple(shape), lambda b, _n=n: (0,) * _n)

    inputs = (dec_input, enc_output, slf_bias, enc_bias) + slf_w + enc_w + ffn_w
    in_specs = [act_spec(dec_input.shape), act_spec(enc_output.shape),
                act_spec(slf_bias.shape), act_spec(enc_bias.shape)]
    in_specs += [const_spec(w.shape) for w in slf_w + enc_w + ffn_w]

    out_shape = (jax.ShapeDtypeStruct((B, Lq, Dm), jnp.float32),
                 jax.ShapeDtypeStruct((H, B, Lq, Lq), jnp.float32),
                 jax.ShapeDtypeStruct((H, B, Lq, Le), jnp.float32))
    out_specs = (pl.BlockSpec((1, Lq, Dm), lambda b: (b, 0, 0)),
                 pl.BlockSpec((H, 1, Lq, Lq), lambda b: (0, b, 0, 0)),
                 pl.BlockSpec((H, 1, Lq, Le), lambda b: (0, b, 0, 0)))

    kernel = functools.partial(decoder_layer_kernel,
                               n_head=H, d_k=Dk, d_v=Dv)

    dec_out, slf_attn, enc_attn = pl.pallas_call(
        kernel,
        grid=(B,),
        in_specs=in_specs,
        out_specs=out_specs,
        out_shape=out_shape,
        compiler_params=pltpu.CompilerParams(
            dimension_semantics=("parallel",)),
    )(*inputs)

    # old repo returns attention stacked as (n_head * mb_size): index h*B + b
    return (dec_out,
            slf_attn.reshape(H * B, Lq, Lq),
            enc_attn.reshape(H * B, Lq, Le))


if __name__ == "__main__":
    key = jax.random.PRNGKey(0)
    B, L_dec, L_enc = 2, 8, 8
    d_model, d_inner, n_head, d_k, d_v = 32, 64, 2, 16, 16

    keys = jax.random.split(key, 8)
    dec_input = jax.random.normal(keys[0], (B, L_dec, d_model), jnp.float32)
    enc_output = jax.random.normal(keys[1], (B, L_enc, d_model), jnp.float32)

    # masks: 1 = masked (torch masked_fill semantics). Causal for self-attn.
    idx = jnp.arange(L_dec)
    slf_mask = jnp.broadcast_to((idx[None, :] > idx[:, None]).astype(jnp.int32),
                                (B, L_dec, L_dec))
    enc_mask = jnp.zeros((B, L_dec, L_enc), jnp.int32)

    def make_mha_params(k):
        ks = jax.random.split(k, 5)
        wq = jax.random.normal(ks[0], (n_head, d_model, d_k), jnp.float32) * 0.1
        wk = jax.random.normal(ks[1], (n_head, d_model, d_k), jnp.float32) * 0.1
        wv = jax.random.normal(ks[2], (n_head, d_model, d_v), jnp.float32) * 0.1
        wp = jax.random.normal(ks[3], (n_head * d_v, d_model), jnp.float32) * 0.1
        bp = jax.random.normal(ks[4], (d_model,), jnp.float32) * 0.01
        gamma = jnp.ones((d_model,), jnp.float32)
        beta = jnp.zeros((d_model,), jnp.float32)
        return wq, wk, wv, wp, bp, gamma, beta

    slf_params = make_mha_params(keys[2])
    enc_params = make_mha_params(keys[3])

    ks = jax.random.split(keys[4], 4)
    w1 = jax.random.normal(ks[0], (d_model, d_inner), jnp.float32) * 0.1
    b1 = jax.random.normal(ks[1], (d_inner,), jnp.float32) * 0.01
    w2 = jax.random.normal(ks[2], (d_inner, d_model), jnp.float32) * 0.1
    b2 = jax.random.normal(ks[3], (d_model,), jnp.float32) * 0.01
    ffn_params = (w1, b1, w2, b2,
                  jnp.ones((d_model,), jnp.float32),
                  jnp.zeros((d_model,), jnp.float32))

    dec_out, slf_attn, enc_attn = decoder_layer(
        dec_input, enc_output, slf_mask, enc_mask,
        slf_params, enc_params, ffn_params)

    jax.block_until_ready((dec_out, slf_attn, enc_attn))
    assert dec_out.shape == (B, L_dec, d_model)
    assert slf_attn.shape == (n_head * B, L_dec, L_dec)
    assert enc_attn.shape == (n_head * B, L_dec, L_enc)
    assert bool(jnp.isfinite(dec_out).all())
    assert bool(jnp.isfinite(slf_attn).all())
    assert bool(jnp.isfinite(enc_attn).all())
    print("KERNEL_OK")
</pallas_src>

<mosaic_0001>
module attributes {stable_mosaic.version = 11 : i64} {
  func.func @decoder_layer_kernel(%arg0: i32, %arg1: memref<1x8x32xf32, #tpu.memory_space<vmem>>, %arg2: memref<1x8x32xf32, #tpu.memory_space<vmem>>, %arg3: memref<1x8x8xbf16, #tpu.memory_space<vmem>>, %arg4: memref<1x8x8xbf16, #tpu.memory_space<vmem>>, %arg5: memref<32x32xbf16, #tpu.memory_space<vmem>>, %arg6: memref<32x32xbf16, #tpu.memory_space<vmem>>, %arg7: memref<32x32xbf16, #tpu.memory_space<vmem>>, %arg8: memref<32x32xbf16, #tpu.memory_space<vmem>>, %arg9: memref<1x32xf32, #tpu.memory_space<vmem>>, %arg10: memref<1x32xf32, #tpu.memory_space<vmem>>, %arg11: memref<1x32xf32, #tpu.memory_space<vmem>>, %arg12: memref<32x32xbf16, #tpu.memory_space<vmem>>, %arg13: memref<32x32xbf16, #tpu.memory_space<vmem>>, %arg14: memref<32x32xbf16, #tpu.memory_space<vmem>>, %arg15: memref<32x32xbf16, #tpu.memory_space<vmem>>, %arg16: memref<1x32xf32, #tpu.memory_space<vmem>>, %arg17: memref<1x32xf32, #tpu.memory_space<vmem>>, %arg18: memref<1x32xf32, #tpu.memory_space<vmem>>, %arg19: memref<32x64xbf16, #tpu.memory_space<vmem>>, %arg20: memref<1x64xf32, #tpu.memory_space<vmem>>, %arg21: memref<64x32xbf16, #tpu.memory_space<vmem>>, %arg22: memref<1x32xf32, #tpu.memory_space<vmem>>, %arg23: memref<1x32xf32, #tpu.memory_space<vmem>>, %arg24: memref<1x32xf32, #tpu.memory_space<vmem>>, %arg25: memref<1x8x32xf32, #tpu.memory_space<vmem>>, %arg26: memref<2x1x8x8xf32, #tpu.memory_space<vmem>>, %arg27: memref<2x1x8x8xf32, #tpu.memory_space<vmem>>) attributes {dimension_semantics = [#tpu.dimension_semantics<parallel>], iteration_bounds = array<i64: 2>, scalar_prefetch = 0 : i64, scratch_operands = 0 : i64, tpu.core_type = #tpu.core_type<tc>, window_params = [{transform_indices = @transform_0, window_bounds = array<i64: 1, 8, 32>}, {transform_indices = @transform_1, window_bounds = array<i64: 1, 8, 32>}, {transform_indices = @transform_2, window_bounds = array<i64: 1, 8, 8>}, {transform_indices = @transform_3, window_bounds = array<i64: 1, 8, 8>}, {pipeline_mode = #tpu.pipeline_mode<synchronous>, transform_indices = @transform_4, window_bounds = array<i64: 32, 32>}, {pipeline_mode = #tpu.pipeline_mode<synchronous>, transform_indices = @transform_5, window_bounds = array<i64: 32, 32>}, {pipeline_mode = #tpu.pipeline_mode<synchronous>, transform_indices = @transform_6, window_bounds = array<i64: 32, 32>}, {pipeline_mode = #tpu.pipeline_mode<synchronous>, transform_indices = @transform_7, window_bounds = array<i64: 32, 32>}, {pipeline_mode = #tpu.pipeline_mode<synchronous>, transform_indices = @transform_8, window_bounds = array<i64: 1, 32>}, {pipeline_mode = #tpu.pipeline_mode<synchronous>, transform_indices = @transform_9, window_bounds = array<i64: 1, 32>}, {pipeline_mode = #tpu.pipeline_mode<synchronous>, transform_indices = @transform_10, window_bounds = array<i64: 1, 32>}, {pipeline_mode = #tpu.pipeline_mode<synchronous>, transform_indices = @transform_11, window_bounds = array<i64: 32, 32>}, {pipeline_mode = #tpu.pipeline_mode<synchronous>, transform_indices = @transform_12, window_bounds = array<i64: 32, 32>}, {pipeline_mode = #tpu.pipeline_mode<synchronous>, transform_indices = @transform_13, window_bounds = array<i64: 32, 32>}, {pipeline_mode = #tpu.pipeline_mode<synchronous>, transform_indices = @transform_14, window_bounds = array<i64: 32, 32>}, {pipeline_mode = #tpu.pipeline_mode<synchronous>, transform_indices = @transform_15, window_bounds = array<i64: 1, 32>}, {pipeline_mode = #tpu.pipeline_mode<synchronous>, transform_indices = @transform_16, window_bounds = array<i64: 1, 32>}, {pipeline_mode = #tpu.pipeline_mode<synchronous>, transform_indices = @transform_17, window_bounds = array<i64: 1, 32>}, {pipeline_mode = #tpu.pipeline_mode<synchronous>, transform_indices = @transform_18, window_bounds = array<i64: 32, 64>}, {pipeline_mode = #tpu.pipeline_mode<synchronous>, transform_indices = @transform_19, window_bounds = array<i64: 1, 64>}, {pipeline_mode = #tpu.pipeline_mode<synchronous>, transform_indices = @transform_20, window_bounds = array<i64: 64, 32>}, {pipeline_mode = #tpu.pipeline_mode<synchronous>, transform_indices = @transform_21, window_bounds = array<i64: 1, 32>}, {pipeline_mode = #tpu.pipeline_mode<synchronous>, transform_indices = @transform_22, window_bounds = array<i64: 1, 32>}, {pipeline_mode = #tpu.pipeline_mode<synchronous>, transform_indices = @transform_23, window_bounds = array<i64: 1, 32>}, {transform_indices = @transform_24, window_bounds = array<i64: 1, 8, 32>}, {transform_indices = @transform_25, window_bounds = array<i64: 2, 1, 8, 8>}, {transform_indices = @transform_26, window_bounds = array<i64: 2, 1, 8, 8>}]} {
    %c0 = arith.constant 0 : index
    %c0_0 = arith.constant 0 : index
    %c0_1 = arith.constant 0 : index
    %0 = vector.load %arg1[%c0, %c0_0, %c0_1] : memref<1x8x32xf32, #tpu.memory_space<vmem>>, vector<1x8x32xf32>
    %1 = vector.shape_cast %0 : vector<1x8x32xf32> to vector<8x32xf32>
    %c0_2 = arith.constant 0 : index
    %c0_3 = arith.constant 0 : index
    %c0_4 = arith.constant 0 : index
    %2 = vector.load %arg2[%c0_2, %c0_3, %c0_4] : memref<1x8x32xf32, #tpu.memory_space<vmem>>, vector<1x8x32xf32>
    %3 = vector.shape_cast %2 : vector<1x8x32xf32> to vector<8x32xf32>
    %c0_5 = arith.constant 0 : index
    %c0_6 = arith.constant 0 : index
    %c0_7 = arith.constant 0 : index
    %4 = vector.load %arg3[%c0_5, %c0_6, %c0_7] : memref<1x8x8xbf16, #tpu.memory_space<vmem>>, vector<1x8x8xbf16>
    %5 = vector.shape_cast %4 : vector<1x8x8xbf16> to vector<8x8xbf16>
    %6 = arith.extf %5 : vector<8x8xbf16> to vector<8x8xf32>
    %c0_8 = arith.constant 0 : index
    %c0_9 = arith.constant 0 : index
    %c0_10 = arith.constant 0 : index
    %7 = vector.load %arg4[%c0_8, %c0_9, %c0_10] : memref<1x8x8xbf16, #tpu.memory_space<vmem>>, vector<1x8x8xbf16>
    %8 = vector.shape_cast %7 : vector<1x8x8xbf16> to vector<8x8xbf16>
    %9 = arith.extf %8 : vector<8x8xbf16> to vector<8x8xf32>
    %c0_11 = arith.constant 0 : index
    %c0_12 = arith.constant 0 : index
    %10 = vector.load %arg5[%c0_11, %c0_12] : memref<32x32xbf16, #tpu.memory_space<vmem>>, vector<32x32xbf16>
    %c0_13 = arith.constant 0 : index
    %c0_14 = arith.constant 0 : index
    %11 = vector.load %arg6[%c0_13, %c0_14] : memref<32x32xbf16, #tpu.memory_space<vmem>>, vector<32x32xbf16>
    %c0_15 = arith.constant 0 : index
    %c0_16 = arith.constant 0 : index
    %12 = vector.load %arg7[%c0_15, %c0_16] : memref<32x32xbf16, #tpu.memory_space<vmem>>, vector<32x32xbf16>
    %c0_17 = arith.constant 0 : index
    %c0_18 = arith.constant 0 : index
    %13 = vector.load %arg8[%c0_17, %c0_18] : memref<32x32xbf16, #tpu.memory_space<vmem>>, vector<32x32xbf16>
    %c0_19 = arith.constant 0 : index
    %c0_20 = arith.constant 0 : index
    %14 = vector.load %arg9[%c0_19, %c0_20] : memref<1x32xf32, #tpu.memory_space<vmem>>, vector<1x32xf32>
    %c0_21 = arith.constant 0 : index
    %c0_22 = arith.constant 0 : index
    %15 = vector.load %arg10[%c0_21, %c0_22] : memref<1x32xf32, #tpu.memory_space<vmem>>, vector<1x32xf32>
    %c0_23 = arith.constant 0 : index
    %c0_24 = arith.constant 0 : index
    %16 = vector.load %arg11[%c0_23, %c0_24] : memref<1x32xf32, #tpu.memory_space<vmem>>, vector<1x32xf32>
    %17 = arith.truncf %1 : vector<8x32xf32> to vector<8x32xbf16>
    %18 = arith.truncf %1 : vector<8x32xf32> to vector<8x32xbf16>
    %cst = arith.constant dense<0.000000e+00> : vector<8x32xf32>
    %19 = tpu.matmul %17, %10, %cst {dimension_numbers = #tpu.dot_dimension_numbers<[1], [0], [0], [1], [0, 0, 1, 1], [], []>} : vector<8x32xbf16>, vector<32x32xbf16>, vector<8x32xf32> -> vector<8x32xf32>
    %cst_25 = arith.constant dense<0.000000e+00> : vector<8x32xf32>
    %20 = tpu.matmul %18, %11, %cst_25 {dimension_numbers = #tpu.dot_dimension_numbers<[1], [0], [0], [1], [0, 0, 1, 1], [], []>} : vector<8x32xbf16>, vector<32x32xbf16>, vector<8x32xf32> -> vector<8x32xf32>
    %cst_26 = arith.constant dense<0.000000e+00> : vector<8x32xf32>
    %21 = tpu.matmul %18, %12, %cst_26 {dimension_numbers = #tpu.dot_dimension_numbers<[1], [0], [0], [1], [0, 0, 1, 1], [], []>} : vector<8x32xbf16>, vector<32x32xbf16>, vector<8x32xf32> -> vector<8x32xf32>
    %22 = vector.extract_strided_slice %19 {offsets = [0, 0], sizes = [8, 16], strides = [1, 1]} : vector<8x32xf32> to vector<8x16xf32>
    %23 = vector.extract_strided_slice %20 {offsets = [0, 0], sizes = [8, 16], strides = [1, 1]} : vector<8x32xf32> to vector<8x16xf32>
    %24 = vector.extract_strided_slice %21 {offsets = [0, 0], sizes = [8, 16], strides = [1, 1]} : vector<8x32xf32> to vector<8x16xf32>
    %25 = arith.truncf %22 : vector<8x16xf32> to vector<8x16xbf16>
    %26 = arith.truncf %23 : vector<8x16xf32> to vector<8x16xbf16>
    "tpu.trace_start"() <{level = 10 : i32, message = "qd,kd->qk"}> : () -> ()
    %cst_27 = arith.constant dense<0.000000e+00> : vector<8x8xf32>
    %27 = tpu.matmul %25, %26, %cst_27 {dimension_numbers = #tpu.dot_dimension_numbers<[1], [1], [0], [0], [0, 0, 1, 0], [], []>} : vector<8x16xbf16>, vector<8x16xbf16>, vector<8x8xf32> -> vector<8x8xf32>
    "tpu.trace_stop"() : () -> ()
    %cst_28 = arith.constant 0.176776692 : f32
    %28 = vector.broadcast %cst_28 : f32 to vector<8x8xf32>
    %29 = arith.mulf %27, %28 : vector<8x8xf32>
    %30 = arith.addf %29, %6 : vector<8x8xf32>
    %cst_29 = arith.constant dense<0xFF800000> : vector<8xf32>
    %31 = vector.multi_reduction <maximumf>, %30, %cst_29 [1] : vector<8x8xf32> to vector<8xf32>
    %32 = vector.shape_cast %31 : vector<8xf32> to vector<8x1xf32>
    %33 = vector.broadcast %32 : vector<8x1xf32> to vector<8x8xf32>
    %34 = arith.subf %30, %33 : vector<8x8xf32>
    %35 = math.exp %34 : vector<8x8xf32>
    %cst_30 = arith.constant dense<0.000000e+00> : vector<8xf32>
    %36 = vector.multi_reduction <add>, %35, %cst_30 [1] : vector<8x8xf32> to vector<8xf32>
    %37 = vector.shape_cast %36 : vector<8xf32> to vector<8x1xf32>
    %38 = tpu.reciprocal %37 {approx = true} : vector<8x1xf32> -> vector<8x1xf32>
    %39 = vector.broadcast %38 : vector<8x1xf32> to vector<8x8xf32>
    %40 = arith.mulf %35, %39 : vector<8x8xf32>
    %41 = vector.shape_cast %40 : vector<8x8xf32> to vector<1x8x8xf32>
    %c0_31 = arith.constant 0 : index
    %c0_32 = arith.constant 0 : index
    %c0_33 = arith.constant 0 : index
    %c0_34 = arith.constant 0 : index
    %42 = vector.load %arg26[%c0_31, %c0_32, %c0_33, %c0_34] : memref<2x1x8x8xf32, #tpu.memory_space<vmem>>, vector<1x1x8x8xf32>
    %43 = vector.shape_cast %42 : vector<1x1x8x8xf32> to vector<1x8x8xf32>
    %44 = vector.shape_cast %41 : vector<1x8x8xf32> to vector<1x1x8x8xf32>
    tpu.vector_store %arg26[%c0_31, %c0_32, %c0_33, %c0_34], %44 {strides = array<i32>} : memref<2x1x8x8xf32, #tpu.memory_space<vmem>>, vector<1x1x8x8xf32>,
    %45 = arith.truncf %40 : vector<8x8xf32> to vector<8x8xbf16>
    %46 = arith.truncf %24 : vector<8x16xf32> to vector<8x16xbf16>
    %cst_35 = arith.constant dense<0.000000e+00> : vector<8x16xf32>
    %47 = tpu.matmul %45, %46, %cst_35 {dimension_numbers = #tpu.dot_dimension_numbers<[1], [0], [0], [1], [0, 0, 1, 1], [], []>} : vector<8x8xbf16>, vector<8x16xbf16>, vector<8x16xf32> -> vector<8x16xf32>
    %48 = vector.extract_strided_slice %19 {offsets = [0, 16], sizes = [8, 16], strides = [1, 1]} : vector<8x32xf32> to vector<8x16xf32>
    %49 = vector.extract_strided_slice %20 {offsets = [0, 16], sizes = [8, 16], strides = [1, 1]} : vector<8x32xf32> to vector<8x16xf32>
    %50 = vector.extract_strided_slice %21 {offsets = [0, 16], sizes = [8, 16], strides = [1, 1]} : vector<8x32xf32> to vector<8x16xf32>
    %51 = arith.truncf %48 : vector<8x16xf32> to vector<8x16xbf16>
    %52 = arith.truncf %49 : vector<8x16xf32> to vector<8x16xbf16>
    "tpu.trace_start"() <{level = 10 : i32, message = "qd,kd->qk"}> : () -> ()
    %cst_36 = arith.constant dense<0.000000e+00> : vector<8x8xf32>
    %53 = tpu.matmul %51, %52, %cst_36 {dimension_numbers = #tpu.dot_dimension_numbers<[1], [1], [0], [0], [0, 0, 1, 0], [], []>} : vector<8x16xbf16>, vector<8x16xbf16>, vector<8x8xf32> -> vector<8x8xf32>
    "tpu.trace_stop"() : () -> ()
    %cst_37 = arith.constant 0.176776692 : f32
    %54 = vector.broadcast %cst_37 : f32 to vector<8x8xf32>
    %55 = arith.mulf %53, %54 : vector<8x8xf32>
    %56 = arith.addf %55, %6 : vector<8x8xf32>
    %cst_38 = arith.constant dense<0xFF800000> : vector<8xf32>
    %57 = vector.multi_reduction <maximumf>, %56, %cst_38 [1] : vector<8x8xf32> to vector<8xf32>
    %58 = vector.shape_cast %57 : vector<8xf32> to vector<8x1xf32>
    %59 = vector.broadcast %58 : vector<8x1xf32> to vector<8x8xf32>
    %60 = arith.subf %56, %59 : vector<8x8xf32>
    %61 = math.exp %60 : vector<8x8xf32>
    %cst_39 = arith.constant dense<0.000000e+00> : vector<8xf32>
    %62 = vector.multi_reduction <add>, %61, %cst_39 [1] : vector<8x8xf32> to vector<8xf32>
    %63 = vector.shape_cast %62 : vector<8xf32> to vector<8x1xf32>
    %64 = tpu.reciprocal %63 {approx = true} : vector<8x1xf32> -> vector<8x1xf32>
    %65 = vector.broadcast %64 : vector<8x1xf32> to vector<8x8xf32>
    %66 = arith.mulf %61, %65 : vector<8x8xf32>
    %67 = vector.shape_cast %66 : vector<8x8xf32> to vector<1x8x8xf32>
    %c1 = arith.constant 1 : index
    %c0_40 = arith.constant 0 : index
    %c0_41 = arith.constant 0 : index
    %c0_42 = arith.constant 0 : index
    %68 = vector.load %arg26[%c1, %c0_40, %c0_41, %c0_42] : memref<2x1x8x8xf32, #tpu.memory_space<vmem>>, vector<1x1x8x8xf32>
    %69 = vector.shape_cast %68 : vector<1x1x8x8xf32> to vector<1x8x8xf32>
    %70 = vector.shape_cast %67 : vector<1x8x8xf32> to vector<1x1x8x8xf32>
    tpu.vector_store %arg26[%c1, %c0_40, %c0_41, %c0_42], %70 {strides = array<i32>} : memref<2x1x8x8xf32, #tpu.memory_space<vmem>>, vector<1x1x8x8xf32>,
    %71 = arith.truncf %66 : vector<8x8xf32> to vector<8x8xbf16>
    %72 = arith.truncf %50 : vector<8x16xf32> to vector<8x16xbf16>
    %cst_43 = arith.constant dense<0.000000e+00> : vector<8x16xf32>
    %73 = tpu.matmul %71, %72, %cst_43 {dimension_numbers = #tpu.dot_dimension_numbers<[1], [0], [0], [1], [0, 0, 1, 1], [], []>} : vector<8x8xbf16>, vector<8x16xbf16>, vector<8x16xf32> -> vector<8x16xf32>
    %74 = tpu.concatenate %47, %73 in 1 : vector<8x16xf32>, vector<8x16xf32> -> vector<8x32xf32>
    %75 = arith.truncf %74 : vector<8x32xf32> to vector<8x32xbf16>
    %cst_44 = arith.constant dense<0.000000e+00> : vector<8x32xf32>
    %76 = tpu.matmul %75, %13, %cst_44 {dimension_numbers = #tpu.dot_dimension_numbers<[1], [0], [0], [1], [0, 0, 1, 1], [], []>} : vector<8x32xbf16>, vector<32x32xbf16>, vector<8x32xf32> -> vector<8x32xf32>
    %77 = vector.broadcast %14 : vector<1x32xf32> to vector<8x32xf32>
    %78 = arith.addf %76, %77 : vector<8x32xf32>
    %79 = arith.addf %78, %1 : vector<8x32xf32>
    %cst_45 = arith.constant dense<0.000000e+00> : vector<8xf32>
    %80 = vector.multi_reduction <add>, %79, %cst_45 [1] : vector<8x32xf32> to vector<8xf32>
    %81 = vector.shape_cast %80 : vector<8xf32> to vector<8x1xf32>
    %cst_46 = arith.constant 3.200000e+01 : f32
    %82 = vector.broadcast %cst_46 : f32 to vector<8x1xf32>
    %83 = arith.divf %81, %82 : vector<8x1xf32>
    %84 = vector.broadcast %83 : vector<8x1xf32> to vector<8x32xf32>
    %85 = arith.subf %79, %84 : vector<8x32xf32>
    %86 = arith.mulf %85, %85 : vector<8x32xf32>
    %cst_47 = arith.constant dense<0.000000e+00> : vector<8xf32>
    %87 = vector.multi_reduction <add>, %86, %cst_47 [1] : vector<8x32xf32> to vector<8xf32>
    %88 = vector.shape_cast %87 : vector<8xf32> to vector<8x1xf32>
    %cst_48 = arith.constant 0.0322580636 : f32
    %89 = vector.broadcast %cst_48 : f32 to vector<8x1xf32>
    %90 = arith.mulf %88, %89 : vector<8x1xf32>
    %91 = math.sqrt %90 : vector<8x1xf32>
    %cst_49 = arith.constant 1.000000e-03 : f32
    %92 = vector.broadcast %cst_49 : f32 to vector<8x1xf32>
    %93 = arith.addf %91, %92 : vector<8x1xf32>
    %94 = tpu.reciprocal %93 {approx = true} : vector<8x1xf32> -> vector<8x1xf32>
    %95 = vector.broadcast %94 : vector<8x1xf32> to vector<8x32xf32>
    %96 = arith.mulf %85, %95 : vector<8x32xf32>
    %97 = vector.broadcast %15 : vector<1x32xf32> to vector<8x32xf32>
    %98 = arith.mulf %96, %97 : vector<8x32xf32>
    %99 = vector.broadcast %16 : vector<1x32xf32> to vector<8x32xf32>
    %100 = arith.addf %98, %99 : vector<8x32xf32>
    %c0_50 = arith.constant 0 : index
    %c0_51 = arith.constant 0 : index
    %101 = vector.load %arg12[%c0_50, %c0_51] : memref<32x32xbf16, #tpu.memory_space<vmem>>, vector<32x32xbf16>
    %c0_52 = arith.constant 0 : index
    %c0_53 = arith.constant 0 : index
    %102 = vector.load %arg13[%c0_52, %c0_53] : memref<32x32xbf16, #tpu.memory_space<vmem>>, vector<32x32xbf16>
    %c0_54 = arith.constant 0 : index
    %c0_55 = arith.constant 0 : index
    %103 = vector.load %arg14[%c0_54, %c0_55] : memref<32x32xbf16, #tpu.memory_space<vmem>>, vector<32x32xbf16>
    %c0_56 = arith.constant 0 : index
    %c0_57 = arith.constant 0 : index
    %104 = vector.load %arg15[%c0_56, %c0_57] : memref<32x32xbf16, #tpu.memory_space<vmem>>, vector<32x32xbf16>
    %c0_58 = arith.constant 0 : index
    %c0_59 = arith.constant 0 : index
    %105 = vector.load %arg16[%c0_58, %c0_59] : memref<1x32xf32, #tpu.memory_space<vmem>>, vector<1x32xf32>
    %c0_60 = arith.constant 0 : index
    %c0_61 = arith.constant 0 : index
    %106 = vector.load %arg17[%c0_60, %c0_61] : memref<1x32xf32, #tpu.memory_space<vmem>>, vector<1x32xf32>
    %c0_62 = arith.constant 0 : index
    %c0_63 = arith.constant 0 : index
    %107 = vector.load %arg18[%c0_62, %c0_63] : memref<1x32xf32, #tpu.memory_space<vmem>>, vector<1x32xf32>
    %108 = arith.truncf %100 : vector<8x32xf32> to vector<8x32xbf16>
    %109 = arith.truncf %3 : vector<8x32xf32> to vector<8x32xbf16>
    %cst_64 = arith.constant dense<0.000000e+00> : vector<8x32xf32>
    %110 = tpu.matmul %108, %101, %cst_64 {dimension_numbers = #tpu.dot_dimension_numbers<[1], [0], [0], [1], [0, 0, 1, 1], [], []>} : vector<8x32xbf16>, vector<32x32xbf16>, vector<8x32xf32> -> vector<8x32xf32>
    %cst_65 = arith.constant dense<0.000000e+00> : vector<8x32xf32>
    %111 = tpu.matmul %109, %102, %cst_65 {dimension_numbers = #tpu.dot_dimension_numbers<[1], [0], [0], [1], [0, 0, 1, 1], [], []>} : vector<8x32xbf16>, vector<32x32xbf16>, vector<8x32xf32> -> vector<8x32xf32>
    %cst_66 = arith.constant dense<0.000000e+00> : vector<8x32xf32>
    %112 = tpu.matmul %109, %103, %cst_66 {dimension_numbers = #tpu.dot_dimension_numbers<[1], [0], [0], [1], [0, 0, 1, 1], [], []>} : vector<8x32xbf16>, vector<32x32xbf16>, vector<8x32xf32> -> vector<8x32xf32>
    %113 = vector.extract_strided_slice %110 {offsets = [0, 0], sizes = [8, 16], strides = [1, 1]} : vector<8x32xf32> to vector<8x16xf32>
    %114 = vector.extract_strided_slice %111 {offsets = [0, 0], sizes = [8, 16], strides = [1, 1]} : vector<8x32xf32> to vector<8x16xf32>
    %115 = vector.extract_strided_slice %112 {offsets = [0, 0], sizes = [8, 16], strides = [1, 1]} : vector<8x32xf32> to vector<8x16xf32>
    %116 = arith.truncf %113 : vector<8x16xf32> to vector<8x16xbf16>
    %117 = arith.truncf %114 : vector<8x16xf32> to vector<8x16xbf16>
    "tpu.trace_start"() <{level = 10 : i32, message = "qd,kd->qk"}> : () -> ()
    %cst_67 = arith.constant dense<0.000000e+00> : vector<8x8xf32>
    %118 = tpu.matmul %116, %117, %cst_67 {dimension_numbers = #tpu.dot_dimension_numbers<[1], [1], [0], [0], [0, 0, 1, 0], [], []>} : vector<8x16xbf16>, vector<8x16xbf16>, vector<8x8xf32> -> vector<8x8xf32>
    "tpu.trace_stop"() : () -> ()
    %cst_68 = arith.constant 0.176776692 : f32
    %119 = vector.broadcast %cst_68 : f32 to vector<8x8xf32>
    %120 = arith.mulf %118, %119 : vector<8x8xf32>
    %121 = arith.addf %120, %9 : vector<8x8xf32>
    %cst_69 = arith.constant dense<0xFF800000> : vector<8xf32>
    %122 = vector.multi_reduction <maximumf>, %121, %cst_69 [1] : vector<8x8xf32> to vector<8xf32>
    %123 = vector.shape_cast %122 : vector<8xf32> to vector<8x1xf32>
    %124 = vector.broadcast %123 : vector<8x1xf32> to vector<8x8xf32>
    %125 = arith.subf %121, %124 : vector<8x8xf32>
    %126 = math.exp %125 : vector<8x8xf32>
    %cst_70 = arith.constant dense<0.000000e+00> : vector<8xf32>
    %127 = vector.multi_reduction <add>, %126, %cst_70 [1] : vector<8x8xf32> to vector<8xf32>
    %128 = vector.shape_cast %127 : vector<8xf32> to vector<8x1xf32>
    %129 = tpu.reciprocal %128 {approx = true} : vector<8x1xf32> -> vector<8x1xf32>
    %130 = vector.broadcast %129 : vector<8x1xf32> to vector<8x8xf32>
    %131 = arith.mulf %126, %130 : vector<8x8xf32>
    %132 = vector.shape_cast %131 : vector<8x8xf32> to vector<1x8x8xf32>
    %c0_71 = arith.constant 0 : index
    %c0_72 = arith.constant 0 : index
    %c0_73 = arith.constant 0 : index
    %c0_74 = arith.constant 0 : index
    %133 = vector.load %arg27[%c0_71, %c0_72, %c0_73, %c0_74] : memref<2x1x8x8xf32, #tpu.memory_space<vmem>>, vector<1x1x8x8xf32>
    %134 = vector.shape_cast %133 : vector<1x1x8x8xf32> to vector<1x8x8xf32>
    %135 = vector.shape_cast %132 : vector<1x8x8xf32> to vector<1x1x8x8xf32>
    tpu.vector_store %arg27[%c0_71, %c0_72, %c0_73, %c0_74], %135 {strides = array<i32>} : memref<2x1x8x8xf32, #tpu.memory_space<vmem>>, vector<1x1x8x8xf32>,
    %136 = arith.truncf %131 : vector<8x8xf32> to vector<8x8xbf16>
    %137 = arith.truncf %115 : vector<8x16xf32> to vector<8x16xbf16>
    %cst_75 = arith.constant dense<0.000000e+00> : vector<8x16xf32>
    %138 = tpu.matmul %136, %137, %cst_75 {dimension_numbers = #tpu.dot_dimension_numbers<[1], [0], [0], [1], [0, 0, 1, 1], [], []>} : vector<8x8xbf16>, vector<8x16xbf16>, vector<8x16xf32> -> vector<8x16xf32>
    %139 = vector.extract_strided_slice %110 {offsets = [0, 16], sizes = [8, 16], strides = [1, 1]} : vector<8x32xf32> to vector<8x16xf32>
    %140 = vector.extract_strided_slice %111 {offsets = [0, 16], sizes = [8, 16], strides = [1, 1]} : vector<8x32xf32> to vector<8x16xf32>
    %141 = vector.extract_strided_slice %112 {offsets = [0, 16], sizes = [8, 16], strides = [1, 1]} : vector<8x32xf32> to vector<8x16xf32>
    %142 = arith.truncf %139 : vector<8x16xf32> to vector<8x16xbf16>
    %143 = arith.truncf %140 : vector<8x16xf32> to vector<8x16xbf16>
    "tpu.trace_start"() <{level = 10 : i32, message = "qd,kd->qk"}> : () -> ()
    %cst_76 = arith.constant dense<0.000000e+00> : vector<8x8xf32>
    %144 = tpu.matmul %142, %143, %cst_76 {dimension_numbers = #tpu.dot_dimension_numbers<[1], [1], [0], [0], [0, 0, 1, 0], [], []>} : vector<8x16xbf16>, vector<8x16xbf16>, vector<8x8xf32> -> vector<8x8xf32>
    "tpu.trace_stop"() : () -> ()
    %cst_77 = arith.constant 0.176776692 : f32
    %145 = vector.broadcast %cst_77 : f32 to vector<8x8xf32>
    %146 = arith.mulf %144, %145 : vector<8x8xf32>
    %147 = arith.addf %146, %9 : vector<8x8xf32>
    %cst_78 = arith.constant dense<0xFF800000> : vector<8xf32>
    %148 = vector.multi_reduction <maximumf>, %147, %cst_78 [1] : vector<8x8xf32> to vector<8xf32>
    %149 = vector.shape_cast %148 : vector<8xf32> to vector<8x1xf32>
    %150 = vector.broadcast %149 : vector<8x1xf32> to vector<8x8xf32>
    %151 = arith.subf %147, %150 : vector<8x8xf32>
    %152 = math.exp %151 : vector<8x8xf32>
    %cst_79 = arith.constant dense<0.000000e+00> : vector<8xf32>
    %153 = vector.multi_reduction <add>, %152, %cst_79 [1] : vector<8x8xf32> to vector<8xf32>
    %154 = vector.shape_cast %153 : vector<8xf32> to vector<8x1xf32>
    %155 = tpu.reciprocal %154 {approx = true} : vector<8x1xf32> -> vector<8x1xf32>
    %156 = vector.broadcast %155 : vector<8x1xf32> to vector<8x8xf32>
    %157 = arith.mulf %152, %156 : vector<8x8xf32>
    %158 = vector.shape_cast %157 : vector<8x8xf32> to vector<1x8x8xf32>
    %c1_80 = arith.constant 1 : index
    %c0_81 = arith.constant 0 : index
    %c0_82 = arith.constant 0 : index
    %c0_83 = arith.constant 0 : index
    %159 = vector.load %arg27[%c1_80, %c0_81, %c0_82, %c0_83] : memref<2x1x8x8xf32, #tpu.memory_space<vmem>>, vector<1x1x8x8xf32>
    %160 = vector.shape_cast %159 : vector<1x1x8x8xf32> to vector<1x8x8xf32>
    %161 = vector.shape_cast %158 : vector<1x8x8xf32> to vector<1x1x8x8xf32>
    tpu.vector_store %arg27[%c1_80, %c0_81, %c0_82, %c0_83], %161 {strides = array<i32>} : memref<2x1x8x8xf32, #tpu.memory_space<vmem>>, vector<1x1x8x8xf32>,
    %162 = arith.truncf %157 : vector<8x8xf32> to vector<8x8xbf16>
    %163 = arith.truncf %141 : vector<8x16xf32> to vector<8x16xbf16>
    %cst_84 = arith.constant dense<0.000000e+00> : vector<8x16xf32>
    %164 = tpu.matmul %162, %163, %cst_84 {dimension_numbers = #tpu.dot_dimension_numbers<[1], [0], [0], [1], [0, 0, 1, 1], [], []>} : vector<8x8xbf16>, vector<8x16xbf16>, vector<8x16xf32> -> vector<8x16xf32>
    %165 = tpu.concatenate %138, %164 in 1 : vector<8x16xf32>, vector<8x16xf32> -> vector<8x32xf32>
    %166 = arith.truncf %165 : vector<8x32xf32> to vector<8x32xbf16>
    %cst_85 = arith.constant dense<0.000000e+00> : vector<8x32xf32>
    %167 = tpu.matmul %166, %104, %cst_85 {dimension_numbers = #tpu.dot_dimension_numbers<[1], [0], [0], [1], [0, 0, 1, 1], [], []>} : vector<8x32xbf16>, vector<32x32xbf16>, vector<8x32xf32> -> vector<8x32xf32>
    %168 = vector.broadcast %105 : vector<1x32xf32> to vector<8x32xf32>
    %169 = arith.addf %167, %168 : vector<8x32xf32>
    %170 = arith.addf %169, %100 : vector<8x32xf32>
    %cst_86 = arith.constant dense<0.000000e+00> : vector<8xf32>
    %171 = vector.multi_reduction <add>, %170, %cst_86 [1] : vector<8x32xf32> to vector<8xf32>
    %172 = vector.shape_cast %171 : vector<8xf32> to vector<8x1xf32>
    %cst_87 = arith.constant 3.200000e+01 : f32
    %173 = vector.broadcast %cst_87 : f32 to vector<8x1xf32>
    %174 = arith.divf %172, %173 : vector<8x1xf32>
    %175 = vector.broadcast %174 : vector<8x1xf32> to vector<8x32xf32>
    %176 = arith.subf %170, %175 : vector<8x32xf32>
    %177 = arith.mulf %176, %176 : vector<8x32xf32>
    %cst_88 = arith.constant dense<0.000000e+00> : vector<8xf32>
    %178 = vector.multi_reduction <add>, %177, %cst_88 [1] : vector<8x32xf32> to vector<8xf32>
    %179 = vector.shape_cast %178 : vector<8xf32> to vector<8x1xf32>
    %cst_89 = arith.constant 0.0322580636 : f32
    %180 = vector.broadcast %cst_89 : f32 to vector<8x1xf32>
    %181 = arith.mulf %179, %180 : vector<8x1xf32>
    %182 = math.sqrt %181 : vector<8x1xf32>
    %cst_90 = arith.constant 1.000000e-03 : f32
    %183 = vector.broadcast %cst_90 : f32 to vector<8x1xf32>
    %184 = arith.addf %182, %183 : vector<8x1xf32>
    %185 = tpu.reciprocal %184 {approx = true} : vector<8x1xf32> -> vector<8x1xf32>
    %186 = vector.broadcast %185 : vector<8x1xf32> to vector<8x32xf32>
    %187 = arith.mulf %176, %186 : vector<8x32xf32>
    %188 = vector.broadcast %106 : vector<1x32xf32> to vector<8x32xf32>
    %189 = arith.mulf %187, %188 : vector<8x32xf32>
    %190 = vector.broadcast %107 : vector<1x32xf32> to vector<8x32xf32>
    %191 = arith.addf %189, %190 : vector<8x32xf32>
    %192 = arith.truncf %191 : vector<8x32xf32> to vector<8x32xbf16>
    %c0_91 = arith.constant 0 : index
    %c0_92 = arith.constant 0 : index
    %193 = vector.load %arg19[%c0_91, %c0_92] : memref<32x64xbf16, #tpu.memory_space<vmem>>, vector<32x64xbf16>
    %cst_93 = arith.constant dense<0.000000e+00> : vector<8x64xf32>
    %194 = tpu.matmul %192, %193, %cst_93 {dimension_numbers = #tpu.dot_dimension_numbers<[1], [0], [0], [1], [0, 0, 1, 1], [], []>} : vector<8x32xbf16>, vector<32x64xbf16>, vector<8x64xf32> -> vector<8x64xf32>
    %c0_94 = arith.constant 0 : index
    %c0_95 = arith.constant 0 : index
    %195 = vector.load %arg20[%c0_94, %c0_95] : memref<1x64xf32, #tpu.memory_space<vmem>>, vector<1x64xf32>
    %196 = vector.broadcast %195 : vector<1x64xf32> to vector<8x64xf32>
    %197 = arith.addf %194, %196 : vector<8x64xf32>
    %cst_96 = arith.constant 0.000000e+00 : f32
    %198 = vector.broadcast %cst_96 : f32 to vector<8x64xf32>
    %199 = arith.maximumf %197, %198 : vector<8x64xf32>
    %200 = arith.truncf %199 : vector<8x64xf32> to vector<8x64xbf16>
    %c0_97 = arith.constant 0 : index
    %c0_98 = arith.constant 0 : index
    %201 = vector.load %arg21[%c0_97, %c0_98] : memref<64x32xbf16, #tpu.memory_space<vmem>>, vector<64x32xbf16>
    %cst_99 = arith.constant dense<0.000000e+00> : vector<8x32xf32>
    %202 = tpu.matmul %200, %201, %cst_99 {dimension_numbers = #tpu.dot_dimension_numbers<[1], [0], [0], [1], [0, 0, 1, 1], [], []>} : vector<8x64xbf16>, vector<64x32xbf16>, vector<8x32xf32> -> vector<8x32xf32>
    %c0_100 = arith.constant 0 : index
    %c0_101 = arith.constant 0 : index
    %203 = vector.load %arg22[%c0_100, %c0_101] : memref<1x32xf32, #tpu.memory_space<vmem>>, vector<1x32xf32>
    %204 = vector.broadcast %203 : vector<1x32xf32> to vector<8x32xf32>
    %205 = arith.addf %202, %204 : vector<8x32xf32>
    %206 = arith.addf %205, %191 : vector<8x32xf32>
    %c0_102 = arith.constant 0 : index
    %c0_103 = arith.constant 0 : index
    %207 = vector.load %arg23[%c0_102, %c0_103] : memref<1x32xf32, #tpu.memory_space<vmem>>, vector<1x32xf32>
    %c0_104 = arith.constant 0 : index
    %c0_105 = arith.constant 0 : index
    %208 = vector.load %arg24[%c0_104, %c0_105] : memref<1x32xf32, #tpu.memory_space<vmem>>, vector<1x32xf32>
    %cst_106 = arith.constant dense<0.000000e+00> : vector<8xf32>
    %209 = vector.multi_reduction <add>, %206, %cst_106 [1] : vector<8x32xf32> to vector<8xf32>
    %210 = vector.shape_cast %209 : vector<8xf32> to vector<8x1xf32>
    %cst_107 = arith.constant 3.200000e+01 : f32
    %211 = vector.broadcast %cst_107 : f32 to vector<8x1xf32>
    %212 = arith.divf %210, %211 : vector<8x1xf32>
    %213 = vector.broadcast %212 : vector<8x1xf32> to vector<8x32xf32>
    %214 = arith.subf %206, %213 : vector<8x32xf32>
    %215 = arith.mulf %214, %214 : vector<8x32xf32>
    %cst_108 = arith.constant dense<0.000000e+00> : vector<8xf32>
    %216 = vector.multi_reduction <add>, %215, %cst_108 [1] : vector<8x32xf32> to vector<8xf32>
    %217 = vector.shape_cast %216 : vector<8xf32> to vector<8x1xf32>
    %cst_109 = arith.constant 0.0322580636 : f32
    %218 = vector.broadcast %cst_109 : f32 to vector<8x1xf32>
    %219 = arith.mulf %217, %218 : vector<8x1xf32>
    %220 = math.sqrt %219 : vector<8x1xf32>
    %cst_110 = arith.constant 1.000000e-03 : f32
    %221 = vector.broadcast %cst_110 : f32 to vector<8x1xf32>
    %222 = arith.addf %220, %221 : vector<8x1xf32>
    %223 = tpu.reciprocal %222 {approx = true} : vector<8x1xf32> -> vector<8x1xf32>
    %224 = vector.broadcast %223 : vector<8x1xf32> to vector<8x32xf32>
    %225 = arith.mulf %214, %224 : vector<8x32xf32>
    %226 = vector.broadcast %207 : vector<1x32xf32> to vector<8x32xf32>
    %227 = arith.mulf %225, %226 : vector<8x32xf32>
    %228 = vector.broadcast %208 : vector<1x32xf32> to vector<8x32xf32>
    %229 = arith.addf %227, %228 : vector<8x32xf32>
    %c0_111 = arith.constant 0 : index
    %c0_112 = arith.constant 0 : index
    %c0_113 = arith.constant 0 : index
    %230 = vector.load %arg25[%c0_111, %c0_112, %c0_113] : memref<1x8x32xf32, #tpu.memory_space<vmem>>, vector<1x8x32xf32>
    %231 = vector.shape_cast %230 : vector<1x8x32xf32> to vector<8x32xf32>
    %232 = vector.shape_cast %229 : vector<8x32xf32> to vector<1x8x32xf32>
    tpu.vector_store %arg25[%c0_111, %c0_112, %c0_113], %232 {strides = array<i32>} : memref<1x8x32xf32, #tpu.memory_space<vmem>>, vector<1x8x32xf32>,
    return
  }
  func.func @transform_0(%arg0: i32) -> (i32, i32, i32) {
    %c0_i32 = arith.constant 0 : i32
    %c0_i32_0 = arith.constant 0 : i32
    %c0_i32_1 = arith.constant 0 : i32
    return %arg0, %c0_i32, %c0_i32_0 : i32, i32, i32
  }
  func.func @transform_1(%arg0: i32) -> (i32, i32, i32) {
    %c0_i32 = arith.constant 0 : i32
    %c0_i32_0 = arith.constant 0 : i32
    %c0_i32_1 = arith.constant 0 : i32
    return %arg0, %c0_i32, %c0_i32_0 : i32, i32, i32
  }
  func.func @transform_2(%arg0: i32) -> (i32, i32, i32) {
    %c0_i32 = arith.constant 0 : i32
    %c0_i32_0 = arith.constant 0 : i32
    %c0_i32_1 = arith.constant 0 : i32
    return %arg0, %c0_i32, %c0_i32_0 : i32, i32, i32
  }
  func.func @transform_3(%arg0: i32) -> (i32, i32, i32) {
    %c0_i32 = arith.constant 0 : i32
    %c0_i32_0 = arith.constant 0 : i32
    %c0_i32_1 = arith.constant 0 : i32
    return %arg0, %c0_i32, %c0_i32_0 : i32, i32, i32
  }
  func.func @transform_4(%arg0: i32) -> (i32, i32) {
    %c0_i32 = arith.constant 0 : i32
    %c0_i32_0 = arith.constant 0 : i32
    %c0_i32_1 = arith.constant 0 : i32
    return %c0_i32, %c0_i32_0 : i32, i32
  }
  func.func @transform_5(%arg0: i32) -> (i32, i32) {
    %c0_i32 = arith.constant 0 : i32
    %c0_i32_0 = arith.constant 0 : i32
    %c0_i32_1 = arith.constant 0 : i32
    return %c0_i32, %c0_i32_0 : i32, i32
  }
  func.func @transform_6(%arg0: i32) -> (i32, i32) {
    %c0_i32 = arith.constant 0 : i32
    %c0_i32_0 = arith.constant 0 : i32
    %c0_i32_1 = arith.constant 0 : i32
    return %c0_i32, %c0_i32_0 : i32, i32
  }
  func.func @transform_7(%arg0: i32) -> (i32, i32) {
    %c0_i32 = arith.constant 0 : i32
    %c0_i32_0 = arith.constant 0 : i32
    %c0_i32_1 = arith.constant 0 : i32
    return %c0_i32, %c0_i32_0 : i32, i32
  }
  func.func @transform_8(%arg0: i32) -> (i32, i32) {
    %c0_i32 = arith.constant 0 : i32
    %c0_i32_0 = arith.constant 0 : i32
    %c0_i32_1 = arith.constant 0 : i32
    return %c0_i32, %c0_i32_0 : i32, i32
  }
  func.func @transform_9(%arg0: i32) -> (i32, i32) {
    %c0_i32 = arith.constant 0 : i32
    %c0_i32_0 = arith.constant 0 : i32
    %c0_i32_1 = arith.constant 0 : i32
    return %c0_i32, %c0_i32_0 : i32, i32
  }
  func.func @transform_10(%arg0: i32) -> (i32, i32) {
    %c0_i32 = arith.constant 0 : i32
    %c0_i32_0 = arith.constant 0 : i32
    %c0_i32_1 = arith.constant 0 : i32
    return %c0_i32, %c0_i32_0 : i32, i32
  }
  func.func @transform_11(%arg0: i32) -> (i32, i32) {
    %c0_i32 = arith.constant 0 : i32
    %c0_i32_0 = arith.constant 0 : i32
    %c0_i32_1 = arith.constant 0 : i32
    return %c0_i32, %c0_i32_0 : i32, i32
  }
  func.func @transform_12(%arg0: i32) -> (i32, i32) {
    %c0_i32 = arith.constant 0 : i32
    %c0_i32_0 = arith.constant 0 : i32
    %c0_i32_1 = arith.constant 0 : i32
    return %c0_i32, %c0_i32_0 : i32, i32
  }
  func.func @transform_13(%arg0: i32) -> (i32, i32) {
    %c0_i32 = arith.constant 0 : i32
    %c0_i32_0 = arith.constant 0 : i32
    %c0_i32_1 = arith.constant 0 : i32
    return %c0_i32, %c0_i32_0 : i32, i32
  }
  func.func @transform_14(%arg0: i32) -> (i32, i32) {
    %c0_i32 = arith.constant 0 : i32
    %c0_i32_0 = arith.constant 0 : i32
    %c0_i32_1 = arith.constant 0 : i32
    return %c0_i32, %c0_i32_0 : i32, i32
  }
  func.func @transform_15(%arg0: i32) -> (i32, i32) {
    %c0_i32 = arith.constant 0 : i32
    %c0_i32_0 = arith.constant 0 : i32
    %c0_i32_1 = arith.constant 0 : i32
    return %c0_i32, %c0_i32_0 : i32, i32
  }
  func.func @transform_16(%arg0: i32) -> (i32, i32) {
    %c0_i32 = arith.constant 0 : i32
    %c0_i32_0 = arith.constant 0 : i32
    %c0_i32_1 = arith.constant 0 : i32
    return %c0_i32, %c0_i32_0 : i32, i32
  }
  func.func @transform_17(%arg0: i32) -> (i32, i32) {
    %c0_i32 = arith.constant 0 : i32
    %c0_i32_0 = arith.constant 0 : i32
    %c0_i32_1 = arith.constant 0 : i32
    return %c0_i32, %c0_i32_0 : i32, i32
  }
  func.func @transform_18(%arg0: i32) -> (i32, i32) {
    %c0_i32 = arith.constant 0 : i32
    %c0_i32_0 = arith.constant 0 : i32
    %c0_i32_1 = arith.constant 0 : i32
    return %c0_i32, %c0_i32_0 : i32, i32
  }
  func.func @transform_19(%arg0: i32) -> (i32, i32) {
    %c0_i32 = arith.constant 0 : i32
    %c0_i32_0 = arith.constant 0 : i32
    %c0_i32_1 = arith.constant 0 : i32
    return %c0_i32, %c0_i32_0 : i32, i32
  }
  func.func @transform_20(%arg0: i32) -> (i32, i32) {
    %c0_i32 = arith.constant 0 : i32
    %c0_i32_0 = arith.constant 0 : i32
    %c0_i32_1 = arith.constant 0 : i32
    return %c0_i32, %c0_i32_0 : i32, i32
  }
  func.func @transform_21(%arg0: i32) -> (i32, i32) {
    %c0_i32 = arith.constant 0 : i32
    %c0_i32_0 = arith.constant 0 : i32
    %c0_i32_1 = arith.constant 0 : i32
    return %c0_i32, %c0_i32_0 : i32, i32
  }
  func.func @transform_22(%arg0: i32) -> (i32, i32) {
    %c0_i32 = arith.constant 0 : i32
    %c0_i32_0 = arith.constant 0 : i32
    %c0_i32_1 = arith.constant 0 : i32
    return %c0_i32, %c0_i32_0 : i32, i32
  }
  func.func @transform_23(%arg0: i32) -> (i32, i32) {
    %c0_i32 = arith.constant 0 : i32
    %c0_i32_0 = arith.constant 0 : i32
    %c0_i32_1 = arith.constant 0 : i32
    return %c0_i32, %c0_i32_0 : i32, i32
  }
  func.func @transform_24(%arg0: i32) -> (i32, i32, i32) {
    %c0_i32 = arith.constant 0 : i32
    %c0_i32_0 = arith.constant 0 : i32
    %c0_i32_1 = arith.constant 0 : i32
    return %arg0, %c0_i32, %c0_i32_0 : i32, i32, i32
  }
  func.func @transform_25(%arg0: i32) -> (i32, i32, i32, i32) {
    %c0_i32 = arith.constant 0 : i32
    %c0_i32_0 = arith.constant 0 : i32
    %c0_i32_1 = arith.constant 0 : i32
    %c0_i32_2 = arith.constant 0 : i32
    return %c0_i32, %arg0, %c0_i32_0, %c0_i32_1 : i32, i32, i32, i32
  }
  func.func @transform_26(%arg0: i32) -> (i32, i32, i32, i32) {
    %c0_i32 = arith.constant 0 : i32
    %c0_i32_0 = arith.constant 0 : i32
    %c0_i32_1 = arith.constant 0 : i32
    %c0_i32_2 = arith.constant 0 : i32
    return %c0_i32, %arg0, %c0_i32_0, %c0_i32_1 : i32, i32, i32, i32
  }
}

</mosaic_0001>

<bundles_post_ra>
// kernel: tpu_custom_call.1
= control target key start
LH: loop header
LB: loop body
LE: loop exit
PB: predicated region body
PF: predicated region fallthrough
CT: control target
= control target key end

     0   :  { %s4558_s0 = inlined_call_operand.vmem [shape: f32[2,8,32], index: 0, kind: input, shape index: {}]   ;;  %s4559_s1 = inlined_call_operand.vmem [shape: f32[2,8,32], index: 1, kind: input, shape index: {}]   ;;  %s4560_s2 = inlined_call_operand.hbm [shape: bf16[2,8,8], index: 2, kind: input, shape index: {}]   ;;  %s4561_s3 = inlined_call_operand.hbm [shape: bf16[2,8,8], index: 3, kind: input, shape index: {}]   ;;  %s4562_s4 = inlined_call_operand.vmem [shape: bf16[32,32], index: 4, kind: input, shape index: {}]   ;;  %s4563_s5 = inlined_call_operand.hbm [shape: bf16[32,32], index: 5, kind: input, shape index: {}]   ;;  %s4564_s6 = inlined_call_operand.hbm [shape: bf16[32,32], index: 6, kind: input, shape index: {}]   ;;  %s4565_s7 = inlined_call_operand.hbm [shape: bf16[32,32], index: 7, kind: input, shape index: {}]   ;;  %s4566_s8 = inlined_call_operand.hbm [shape: f32[1,32], index: 8, kind: input, shape index: {}]   ;;  %s4567_s9 = inlined_call_operand.hbm [shape: f32[1,32], index: 9, kind: input, shape index: {}]   ;;  %s4568_s10 = inlined_call_operand.hbm [shape: f32[1,32], index: 10, kind: input, shape index: {}]   ;;  %s4569_s11 = inlined_call_operand.vmem [shape: bf16[32,32], index: 11, kind: input, shape index: {}]   ;;  %s4570_s12 = inlined_call_operand.hbm [shape: bf16[32,32], index: 12, kind: input, shape index: {}]   ;;  %s4571_s13 = inlined_call_operand.vmem [shape: bf16[32,32], index: 13, kind: input, shape index: {}]   ;;  %s4572_s14 = inlined_call_operand.hbm [shape: bf16[32,32], index: 14, kind: input, shape index: {}]   ;;  %s4573_s15 = inlined_call_operand.hbm [shape: f32[1,32], index: 15, kind: input, shape index: {}]   ;;  %s4574_s16 = inlined_call_operand.hbm [shape: f32[1,32], index: 16, kind: input, shape index: {}]   ;;  %s4575_s17 = inlined_call_operand.hbm [shape: f32[1,32], index: 17, kind: input, shape index: {}]   ;;  %s4576_s18 = inlined_call_operand.vmem [shape: bf16[32,64], index: 18, kind: input, shape index: {}]   ;;  %s4577_s19 = inlined_call_operand.vmem [shape: f32[1,64], index: 19, kind: input, shape index: {}]   ;;  %s4578_s20 = inlined_call_operand.vmem [shape: bf16[64,32], index: 20, kind: input, shape index: {}]   ;;  %s4579_s21 = inlined_call_operand.vmem [shape: f32[1,32], index: 21, kind: input, shape index: {}]   ;;  %s4580_s22 = inlined_call_operand.vmem [shape: f32[1,32], index: 22, kind: input, shape index: {}]   ;;  %s4581_s23 = inlined_call_operand.vmem [shape: f32[1,32], index: 23, kind: input, shape index: {}]   ;;  %s4582_s24 = inlined_call_operand.hbm [shape: f32[2,8,32], index: 24, kind: output, shape index: {0}]   ;;  %s4583_s25 = inlined_call_operand.hbm [shape: f32[2,2,8,8], index: 25, kind: output, shape index: {1}]   ;;  %s4584_s26 = inlined_call_operand.hbm [shape: f32[2,2,8,8], index: 26, kind: output, shape index: {2}]  }
   0x1   :  { %4616 = sst [smem:[#allocation37_spill]] %s4558_s0 }
   0x2   :  { %4617 = sst [smem:[#allocation38_spill]] %s4559_s1 }
   0x3   :  { %4618 = sst [smem:[#allocation39_spill]] %s4560_s2 }
   0x4   :  { %4619 = sst [smem:[#allocation40_spill]] %s4561_s3 }
   0x5   :  { %4620 = sst [smem:[#allocation41_spill]] %s4562_s4 }
   0x6   :  { %4621 = sst [smem:[#allocation42_spill]] %s4563_s5 }
   0x7   :  { %4622 = sst [smem:[#allocation43_spill]] %s4564_s6 }
   0x8   :  { %4623 = sst [smem:[#allocation44_spill]] %s4565_s7 }
   0x9   :  { %4624 = sst [smem:[#allocation45_spill]] %s4566_s8 }
   0xa   :  { %4625 = sst [smem:[#allocation46_spill]] %s4567_s9 }
   0xb   :  { %4626 = sst [smem:[#allocation47_spill]] %s4568_s10 }
   0xc   :  { %4627 = sst [smem:[#allocation48_spill]] %s4570_s12 }
   0xd   :  { %4628 = sst [smem:[#allocation49_spill]] %s4572_s14 }
   0xe   :  { %4629 = sst [smem:[#allocation50_spill]] %s4573_s15 }
   0xf   :  { %4630 = sst [smem:[#allocation51_spill]] %s4574_s16 }
  0x10   :  { %4631 = sst [smem:[#allocation52_spill]] %s4575_s17 }
  0x11   :  { %4632 = sst [smem:[#allocation53_spill]] %s4576_s18 }
  0x12   :  { %4633 = sst [smem:[#allocation54_spill]] %s4577_s19 }
  0x13   :  { %4634 = sst [smem:[#allocation55_spill]] %s4578_s20 }
  0x14   :  { %4635 = sst [smem:[#allocation56_spill]] %s4579_s21 }
  0x15   :  { %4636 = sst [smem:[#allocation57_spill]] %s4580_s22 }
  0x16   :  { %4637 = sst [smem:[#allocation58_spill]] %s4581_s23 }
  0x17   :  { %4638 = sst [smem:[#allocation59_spill]] %s4582_s24 }
  0x18   :  { %4639 = sst [smem:[#allocation60_spill]] %s4583_s25 }
  0x19   :  { %4640 = sst [smem:[#allocation61_spill]] %s4584_s26 }
  0x1a   :  { %32 = vsyncpa [#allocation3], 0 }
  0x1b   :  { %34 = vsyncpa [#allocation3 + $0x1], 0 }
  0x1c   :  { %35 = vsyncpa [#allocation6], 0 }
  0x1d   :  { %37 = vsyncpa [#allocation6 + $0x1], 0 }
  0x1e   :  { %38 = vsyncpa [#allocation9], 0 }
  0x1f   :  { %39 = vsyncpa [#allocation12], 0 }
  0x20   :  { %40 = vsyncpa [#allocation15], 0 }
  0x21   :  { %41 = vsyncpa [#allocation18], 0 }
  0x22   :  { %42 = vsyncpa [#allocation21], 0 }
  0x23   :  { %43 = vsyncpa [#allocation4], 0 }
  0x24   :  { %45 = vsyncpa [#allocation4 + $0x1], 0 }
  0x25   :  { %46 = vsyncpa [#allocation25], 0 }
  0x26   :  { %48 = vsyncpa [#allocation25 + $0x1], 0  ;;  %s3793_s27 = smov 0   ;;  %s3795_s3 = smov 0  }
  0x27   :  { %s3797_s7 = smov 0   ;;  %s3799_s28 = smov 0  }
  0x28 LB: > { %s3633_s8 = smov [#allocation7]   ;;  %s3814_s29 = sadd.s32 4294967295, %s3631_s28   ;;  %s3631_s28 = sphi %s3799_s28, %s4697_s28   ;;  %s3627_s7 = sphi %s3797_s7, %s4696_s7   ;;  %s3623_s3 = sphi %s3795_s3, %s4695_s3   ;;  %s3619_s27 = sphi %s3793_s27, %s4694_s27  }
  0x29   : > { %s676_s4 = sshll.u32 %s3633_s8, 4  ;;  %p2602_p0 = scmp.ge.s32.totalorder %s3631_s28, 1  ;;  %s3819_s4 = int_to_ptr.vmem [resolvable:$true] %s676_s4 }
  0x2a   : > { %p4604_p1 = scmp.eq.s32.totalorder %s3814_s29, 0  ;;  %p661_p2 = scmp.lt.s32.totalorder %s3631_s28, 3 }
  0x2b   : > { %s3634_s9 = smov [#allocation8]   ;;  %s3635_s5 = smov [#allocation11]  }
  0x2c   : > { %p3821_p3 = pnand %p2602_p0, %p661_p2  ;;  %s689_s30 = sshll.u32 %s3634_s9, 4  ;;  %s3834_s30 = int_to_ptr.vmem [resolvable:$true] %s689_s30 }
  0x2d   : > { %s716_s10 = sshll.u32 %s3635_s5, 4  ;;  %s4643_s8 = sld [smem:[#allocation42_spill]]  ;;  %s3836_s10 = int_to_ptr.vmem [resolvable:$true] %s716_s10 }
  0x2e   : > { %s4641_s0 = scalar_select %p3821_p3, 1, 0 }
  0x2f   : > { %p2932_p5 = pneg %p3821_p3 }
  0x31   : > { %p3830_p6 = pnand %p2932_p5, %p4604_p1 }
  0x33   : > { %s3109_s24 = scalar_lea.hbm %s4643_s8, 256  ;;  %p3846_p8 = pneg %p3830_p6 }
  0x34   : > { %p3110_p7 = scmp.ne.s32.totalorder %s4643_s8, %s3109_s24  ;;  %p3116_p11 = scmp.lt.u32.totalorder %s3109_s24, %s4643_s8 }
  0x36   : > { %p3112_p9 = pnand %p3846_p8, %p3110_p7 }
  0x38   : > { %p3113_p10 = pneg %p3112_p9 }
  0x3a   : > { %p3118_p12 = pnand %p3116_p11, %p3113_p10 }
  0x3c   : > { %3121 = shalt.err (!%p3118_p12)
}
  0x3d   : > { %s3122_s22 = scalar_lea.vmem %s3819_s4, 256  ;;  %p3130_p5 = scmp.lt.s32.totalorder %s3819_s4, %s3819_s4 }
  0x3e   : > { %p3123_p13 = scmp.ne.s32.totalorder %s3819_s4, %s3122_s22  ;;  %p3131_p4 = scmp.lt.s32.totalorder %s3122_s22, %s3122_s22 }
  0x40   : > { %p3125_p0 = pnand %p3123_p13, %p3846_p8  ;;  %p3132_p7 = por %p3131_p4, %p3130_p5 }
  0x42   : > { %p3126_p2 = pneg %p3125_p0 }
  0x44   : > { %p3133_p9 = pnand %p3132_p7, %p3126_p2 }
  0x46   : > { %3136 = shalt.err (!%p3133_p9)
}
  0x47   : > { %s4599_s23 = smov 64   ;;  %s4601_s24 = smov 4  }
  0x48   : > { %2935 = dma.hbm_to_vmem [thread:$0]  (!%p3830_p6), %s4643_s8, 256, %s3819_s4, [#allocation6], %s4599_s23, %s4599_s23, %s4601_s24  }
  0x49   : > { %s4645_s25 = sld [smem:[#allocation43_spill]] }
  0x4f   : > { %s3137_s22 = scalar_lea.hbm %s4645_s25, 256 }
  0x50   : > { %p3138_p4 = scmp.ne.s32.totalorder %s4645_s25, %s3137_s22  ;;  %p3144_p12 = scmp.lt.u32.totalorder %s3137_s22, %s4645_s25 }
  0x52   : > { %p3140_p10 = pnand %p3138_p4, %p3846_p8 }
  0x54   : > { %p3141_p11 = pneg %p3140_p10 }
  0x56   : > { %p3146_p13 = pnand %p3144_p12, %p3141_p11 }
  0x58   : > { %3149 = shalt.err (!%p3146_p13)
}
  0x59   : > { %s3150_s4 = scalar_lea.vmem %s3834_s30, 256  ;;  %p3158_p7 = scmp.lt.s32.totalorder %s3834_s30, %s3834_s30 }
  0x5a   : > { %p3151_p0 = scmp.ne.s32.totalorder %s3834_s30, %s3150_s4  ;;  %p3159_p9 = scmp.lt.s32.totalorder %s3150_s4, %s3150_s4 }
  0x5c   : > { %p3153_p2 = pnand %p3151_p0, %p3846_p8  ;;  %p3160_p4 = por %p3159_p9, %p3158_p7 }
  0x5e   : > { %p3154_p5 = pneg %p3153_p2 }
  0x60   : > { %p3161_p10 = pnand %p3160_p4, %p3154_p5 }
  0x62   : > { %3164 = shalt.err (!%p3161_p10)
}
  0x63   : > { %2938 = dma.hbm_to_vmem [thread:$0]  (!%p3830_p6), %s4645_s25, 256, %s3834_s30, [#allocation9], %s4599_s23, %s4599_s23, %s4601_s24  }
  0x64   : > { %s4646_s26 = sld [smem:[#allocation45_spill]] }
  0x6a   : > { %s3165_s6 = scalar_lea.hbm %s4646_s26, 16 }
  0x6b   : > { %p3166_p11 = scmp.ne.s32.totalorder %s4646_s26, %s3165_s6  ;;  %p3172_p0 = scmp.lt.u32.totalorder %s3165_s6, %s4646_s26 }
  0x6d   : > { %p3168_p12 = pnand %p3166_p11, %p3846_p8 }
  0x6f   : > { %p3169_p13 = pneg %p3168_p12 }
  0x71   : > { %p3174_p2 = pnand %p3172_p0, %p3169_p13 }
  0x73   : > { %3177 = shalt.err (!%p3174_p2)
}
  0x74   : > { %s3178_s30 = scalar_lea.vmem %s3836_s10, 16  ;;  %s3185_s18 = scalar_lea.vmem %s3836_s10, 32 }
  0x75   : > { %p3179_p5 = scmp.ne.s32.totalorder %s3836_s10, %s3178_s30  ;;  %p3186_p4 = scmp.lt.s32.totalorder %s3836_s10, %s3836_s10 }
  0x76   : > { %p3187_p10 = scmp.lt.s32.totalorder %s3185_s18, %s3178_s30 }
  0x77   : > { %p3181_p7 = pnand %p3179_p5, %p3846_p8 }
  0x78   : > { %p3188_p11 = por %p3187_p10, %p3186_p4 }
  0x79   : > { %p3182_p9 = pneg %p3181_p7 }
  0x7b   : > { %p3189_p12 = pnand %p3188_p11, %p3182_p9 }
  0x7d   : > { %3192 = shalt.err (!%p3189_p12)
}
  0x7e   : > { %2944 = dma.hbm_to_vmem [thread:$0]  (!%p3830_p6), %s4646_s26, 16, %s3836_s10, [#allocation12]  }
  0x7f   : > { %s3638_s21 = smov [#allocation14]   ;;  %s3639_s1 = smov [#allocation17]  }
  0x80   : > { %s738_s6 = sshll.u32 %s3638_s21, 4  ;;  %s767_s5 = sshll.u32 %s3639_s1, 4  ;;  %s739_s6 = int_to_ptr.vmem [resolvable:$true] %s738_s6  ;;  %s768_s5 = int_to_ptr.vmem [resolvable:$true] %s767_s5 }
  0x81   : > { %s4647_s23 = sld [smem:[#allocation47_spill]] }
  0x87   : > { %s3193_s30 = scalar_lea.hbm %s4647_s23, 16 }
  0x88   : > { %p3194_p13 = scmp.ne.s32.totalorder %s4647_s23, %s3193_s30  ;;  %p3200_p5 = scmp.lt.u32.totalorder %s3193_s30, %s4647_s23 }
  0x8a   : > { %p3196_p0 = pnand %p3194_p13, %p3846_p8 }
  0x8c   : > { %p3197_p2 = pneg %p3196_p0 }
  0x8e   : > { %p3202_p7 = pnand %p3200_p5, %p3197_p2 }
  0x90   : > { %3205 = shalt.err (!%p3202_p7)
}
  0x91   : > { %s3206_s10 = scalar_lea.vmem %s739_s6, 16  ;;  %s3213_s20 = scalar_lea.vmem %s739_s6, 32 }
  0x92   : > { %p3207_p9 = scmp.ne.s32.totalorder %s739_s6, %s3206_s10  ;;  %p3214_p11 = scmp.lt.s32.totalorder %s739_s6, %s739_s6 }
  0x93   : > { %p3215_p12 = scmp.lt.s32.totalorder %s3213_s20, %s3206_s10 }
  0x94   : > { %p3209_p4 = pnand %p3207_p9, %p3846_p8 }
  0x95   : > { %p3216_p1 = por %p3215_p12, %p3214_p11 }
  0x96   : > { %p3210_p10 = pneg %p3209_p4 }
  0x98   : > { %p3217_p3 = pnand %p3216_p1, %p3210_p10 }
  0x9a   : > { %3220 = shalt.err (!%p3217_p3)
}
  0x9b   : > { %2950 = dma.hbm_to_vmem [thread:$0]  (!%p3830_p6), %s4647_s23, 16, %s739_s6, [#allocation15]  }
  0x9c   : > { %s4648_s14 = sld [smem:[#allocation49_spill]] }
  0xa2   : > { %s3221_s22 = scalar_lea.hbm %s4648_s14, 256 }
  0xa3   : > { %p3222_p13 = scmp.ne.s32.totalorder %s4648_s14, %s3221_s22  ;;  %p3228_p3 = scmp.lt.u32.totalorder %s3221_s22, %s4648_s14 }
  0xa5   : > { %p3224_p0 = pnand %p3222_p13, %p3846_p8 }
  0xa7   : > { %p3225_p1 = pneg %p3224_p0 }
  0xa9   : > { %p3230_p2 = pnand %p3228_p3, %p3225_p1 }
  0xab   : > { %3233 = shalt.err (!%p3230_p2)
}
  0xac   : > { %s3234_s10 = scalar_lea.vmem %s768_s5, 256  ;;  %p3242_p4 = scmp.lt.s32.totalorder %s768_s5, %s768_s5 }
  0xad   : > { %p3235_p5 = scmp.ne.s32.totalorder %s768_s5, %s3234_s10  ;;  %p3243_p10 = scmp.lt.s32.totalorder %s3234_s10, %s3234_s10 }
  0xaf   : > { %p3237_p7 = pnand %p3235_p5, %p3846_p8  ;;  %p3244_p11 = por %p3243_p10, %p3242_p4 }
  0xb1   : > { %p3238_p9 = pneg %p3237_p7 }
  0xb3   : > { %p3245_p12 = pnand %p3244_p11, %p3238_p9 }
  0xb5   : > { %3248 = shalt.err (!%p3245_p12)
}
  0xb6   : > { %s4649_s6 = smov 4   ;;  %s4650_s20 = smov 64  }
  0xb7   : > { %2956 = dma.hbm_to_vmem [thread:$0]  (!%p3830_p6), %s4648_s14, 256, %s768_s5, [#allocation18], %s4650_s20, %s4650_s20, %s4649_s6  }
  0xb8   : > { %s3640_s8 = smov [#allocation20]   ;;  %s3641_s22 = smov [#allocation10]  }
  0xb9   : > { %s792_s1 = sshll.u32 %s3640_s8, 4  ;;  %s702_s4 = sshll.u32 %s3641_s22, 4  ;;  %s793_s1 = int_to_ptr.vmem [resolvable:$true] %s792_s1  ;;  %s703_s4 = int_to_ptr.vmem [resolvable:$true] %s702_s4 }
  0xba   : > { %s4651_s16 = sld [smem:[#allocation51_spill]] }
  0xc0   : > { %s3249_s19 = scalar_lea.hbm %s4651_s16, 16 }
  0xc1   : > { %p3250_p13 = scmp.ne.s32.totalorder %s4651_s16, %s3249_s19  ;;  %p3256_p3 = scmp.lt.u32.totalorder %s3249_s19, %s4651_s16 }
  0xc3   : > { %p3252_p0 = pnand %p3250_p13, %p3846_p8 }
  0xc5   : > { %p3253_p1 = pneg %p3252_p0 }
  0xc7   : > { %p3258_p2 = pnand %p3256_p3, %p3253_p1 }
  0xc9   : > { %3261 = shalt.err (!%p3258_p2)
}
  0xca   : > { %s3262_s5 = scalar_lea.vmem %s793_s1, 16  ;;  %s3269_s21 = scalar_lea.vmem %s793_s1, 32 }
  0xcb   : > { %p3263_p5 = scmp.ne.s32.totalorder %s793_s1, %s3262_s5  ;;  %p3270_p4 = scmp.lt.s32.totalorder %s793_s1, %s793_s1 }
  0xcc   : > { %p3271_p10 = scmp.lt.s32.totalorder %s3269_s21, %s3262_s5 }
  0xcd   : > { %p3265_p7 = pnand %p3263_p5, %p3846_p8 }
  0xce   : > { %p3272_p11 = por %p3271_p10, %p3270_p4 }
  0xcf   : > { %p3266_p9 = pneg %p3265_p7 }
  0xd1   : > { %p3273_p12 = pnand %p3272_p11, %p3266_p9 }
  0xd3   : > { %3276 = shalt.err (!%p3273_p12)
}
  0xd4   : > { %2962 = dma.hbm_to_vmem [thread:$0]  (!%p3830_p6), %s4651_s16, 16, %s793_s1, [#allocation21]  }
  0xd5   : > { %s4652_s30 = sld [smem:[#allocation44_spill]] }
  0xdb   : > { %s3277_s18 = scalar_lea.hbm %s4652_s30, 256 }
  0xdc   : > { %p3278_p13 = scmp.ne.s32.totalorder %s4652_s30, %s3277_s18  ;;  %p3284_p3 = scmp.lt.u32.totalorder %s3277_s18, %s4652_s30 }
  0xde   : > { %p3280_p0 = pnand %p3278_p13, %p3846_p8 }
  0xe0   : > { %p3281_p1 = pneg %p3280_p0 }
  0xe2   : > { %p3286_p2 = pnand %p3284_p3, %p3281_p1 }
  0xe4   : > { %3289 = shalt.err (!%p3286_p2)
}
  0xe5   : > { %s3290_s21 = scalar_lea.vmem %s703_s4, 256  ;;  %p3298_p4 = scmp.lt.s32.totalorder %s703_s4, %s703_s4 }
  0xe6   : > { %p3291_p5 = scmp.ne.s32.totalorder %s703_s4, %s3290_s21  ;;  %p3299_p10 = scmp.lt.s32.totalorder %s3290_s21, %s3290_s21 }
  0xe8   : > { %p3293_p7 = pnand %p3291_p5, %p3846_p8  ;;  %p3300_p11 = por %p3299_p10, %p3298_p4 }
  0xea   : > { %p3294_p9 = pneg %p3293_p7 }
  0xec   : > { %p3301_p12 = pnand %p3300_p11, %p3294_p9 }
  0xee   : > { %3304 = shalt.err (!%p3301_p12)
}
  0xef   : > { %2941 = dma.hbm_to_vmem [thread:$0]  (!%p3830_p6), %s4652_s30, 256, %s703_s4, [#allocation9], %s4650_s20, %s4650_s20, %s4649_s6  }
  0xf0   : > { %s3642_s8 = smov [#allocation13]   ;;  %s3643_s22 = smov [#allocation16]  }
  0xf1   : > { %s727_s25 = sshll.u32 %s3642_s8, 4  ;;  %s751_s18 = sshll.u32 %s3643_s22, 4  ;;  %s728_s25 = int_to_ptr.vmem [resolvable:$true] %s727_s25  ;;  %s752_s18 = int_to_ptr.vmem [resolvable:$true] %s751_s18 }
  0xf2   : > { %s4653_s24 = sld [smem:[#allocation46_spill]] }
  0xf8   : > { %s3305_s5 = scalar_lea.hbm %s4653_s24, 16 }
  0xf9   : > { %p3306_p13 = scmp.ne.s32.totalorder %s4653_s24, %s3305_s5  ;;  %p3312_p3 = scmp.lt.u32.totalorder %s3305_s5, %s4653_s24 }
  0xfb   : > { %p3308_p0 = pnand %p3306_p13, %p3846_p8 }
  0xfd   : > { %p3309_p1 = pneg %p3308_p0 }
  0xff   : > { %p3314_p2 = pnand %p3312_p3, %p3309_p1 }
 0x101   : > { %3317 = shalt.err (!%p3314_p2)
}
 0x102   : > { %s3318_s4 = scalar_lea.vmem %s728_s25, 16  ;;  %s3325_s23 = scalar_lea.vmem %s728_s25, 32 }
 0x103   : > { %p3319_p5 = scmp.ne.s32.totalorder %s728_s25, %s3318_s4  ;;  %p3326_p4 = scmp.lt.s32.totalorder %s728_s25, %s728_s25 }
 0x104   : > { %p3327_p10 = scmp.lt.s32.totalorder %s3325_s23, %s3318_s4 }
 0x105   : > { %p3321_p7 = pnand %p3319_p5, %p3846_p8 }
 0x106   : > { %p3328_p11 = por %p3327_p10, %p3326_p4 }
 0x107   : > { %p3322_p9 = pneg %p3321_p7 }
 0x109   : > { %p3329_p12 = pnand %p3328_p11, %p3322_p9 }
 0x10b   : > { %3332 = shalt.err (!%p3329_p12)
}
 0x10c   : > { %2947 = dma.hbm_to_vmem [thread:$0]  (!%p3830_p6), %s4653_s24, 16, %s728_s25, [#allocation12]  }
 0x10d   : > { %s4654_s12 = sld [smem:[#allocation48_spill]] }
 0x113   : > { %s3333_s19 = scalar_lea.hbm %s4654_s12, 256 }
 0x114   : > { %p3334_p13 = scmp.ne.s32.totalorder %s4654_s12, %s3333_s19  ;;  %p3340_p3 = scmp.lt.u32.totalorder %s3333_s19, %s4654_s12 }
 0x116   : > { %p3336_p0 = pnand %p3334_p13, %p3846_p8 }
 0x118   : > { %p3337_p1 = pneg %p3336_p0 }
 0x11a   : > { %p3342_p2 = pnand %p3340_p3, %p3337_p1 }
 0x11c   : > { %3345 = shalt.err (!%p3342_p2)
}
 0x11d   : > { %s3346_s4 = scalar_lea.vmem %s752_s18, 256  ;;  %p3354_p4 = scmp.lt.s32.totalorder %s752_s18, %s752_s18 }
 0x11e   : > { %p3347_p5 = scmp.ne.s32.totalorder %s752_s18, %s3346_s4  ;;  %p3355_p10 = scmp.lt.s32.totalorder %s3346_s4, %s3346_s4 }
 0x120   : > { %p3349_p7 = pnand %p3347_p5, %p3846_p8  ;;  %p3356_p11 = por %p3355_p10, %p3354_p4 }
 0x122   : > { %p3350_p9 = pneg %p3349_p7 }
 0x124   : > { %p3357_p12 = pnand %p3356_p11, %p3350_p9 }
 0x126   : > { %3360 = shalt.err (!%p3357_p12)
}
 0x127   : > { %2953 = dma.hbm_to_vmem [thread:$0]  (!%p3830_p6), %s4654_s12, 256, %s752_s18, [#allocation15], %s4650_s20, %s4650_s20, %s4649_s6  }
 0x128   : > { %s3644_s14 = smov [#allocation19]   ;;  %s3645_s16 = smov [#allocation22]  }
 0x129   : > { %s781_s8 = sshll.u32 %s3644_s14, 4  ;;  %s803_s22 = sshll.u32 %s3645_s16, 4  ;;  %s782_s8 = int_to_ptr.vmem [resolvable:$true] %s781_s8  ;;  %s804_s22 = int_to_ptr.vmem [resolvable:$true] %s803_s22 }
 0x12a   : > { %s4655_s15 = sld [smem:[#allocation50_spill]] }
 0x130   : > { %s3361_s5 = scalar_lea.hbm %s4655_s15, 16 }
 0x131   : > { %p3362_p13 = scmp.ne.s32.totalorder %s4655_s15, %s3361_s5  ;;  %p3368_p3 = scmp.lt.u32.totalorder %s3361_s5, %s4655_s15 }
 0x133   : > { %p3364_p0 = pnand %p3362_p13, %p3846_p8 }
 0x135   : > { %p3365_p1 = pneg %p3364_p0 }
 0x137   : > { %p3370_p2 = pnand %p3368_p3, %p3365_p1 }
 0x139   : > { %3373 = shalt.err (!%p3370_p2)
}
 0x13a   : > { %s3374_s6 = scalar_lea.vmem %s782_s8, 16  ;;  %s3381_s20 = scalar_lea.vmem %s782_s8, 32 }
 0x13b   : > { %p3375_p5 = scmp.ne.s32.totalorder %s782_s8, %s3374_s6  ;;  %p3382_p4 = scmp.lt.s32.totalorder %s782_s8, %s782_s8 }
 0x13c   : > { %p3383_p10 = scmp.lt.s32.totalorder %s3381_s20, %s3374_s6 }
 0x13d   : > { %p3377_p7 = pnand %p3375_p5, %p3846_p8 }
 0x13e   : > { %p3384_p11 = por %p3383_p10, %p3382_p4 }
 0x13f   : > { %p3378_p9 = pneg %p3377_p7 }
 0x141   : > { %p3385_p12 = pnand %p3384_p11, %p3378_p9 }
 0x143   : > { %3388 = shalt.err (!%p3385_p12)
}
 0x144   : > { %2959 = dma.hbm_to_vmem [thread:$0]  (!%p3830_p6), %s4655_s15, 16, %s782_s8, [#allocation18]  }
 0x145   : > { %s4656_s17 = sld [smem:[#allocation52_spill]] }
 0x14b   : > { %s3389_s19 = scalar_lea.hbm %s4656_s17, 16 }
 0x14c   : > { %p3390_p13 = scmp.ne.s32.totalorder %s4656_s17, %s3389_s19  ;;  %p3396_p3 = scmp.lt.u32.totalorder %s3389_s19, %s4656_s17 }
 0x14e   : > { %p3392_p0 = pnand %p3390_p13, %p3846_p8 }
 0x150   : > { %p3393_p1 = pneg %p3392_p0 }
 0x152   : > { %p3398_p2 = pnand %p3396_p3, %p3393_p1 }
 0x154   : > { %3401 = shalt.err (!%p3398_p2)
}
 0x155   : > { %s3402_s4 = scalar_lea.vmem %s804_s22, 16  ;;  %s3409_s8 = scalar_lea.vmem %s804_s22, 32 }
 0x156   : > { %p3403_p5 = scmp.ne.s32.totalorder %s804_s22, %s3402_s4  ;;  %p3410_p4 = scmp.lt.s32.totalorder %s804_s22, %s804_s22 }
 0x157   : > { %p3411_p10 = scmp.lt.s32.totalorder %s3409_s8, %s3402_s4 }
 0x158   : > { %p3405_p7 = pnand %p3403_p5, %p3846_p8 }
 0x159   : > { %p3412_p11 = por %p3411_p10, %p3410_p4 }
 0x15a   : > { %p3406_p9 = pneg %p3405_p7 }
 0x15c   : > { %p3413_p12 = pnand %p3412_p11, %p3406_p9 }
 0x15e   : > { %3416 = shalt.err (!%p3413_p12)
}
 0x15f   : > { %2965 = dma.hbm_to_vmem [thread:$0]  (!%p3830_p6), %s4656_s17, 16, %s804_s22, [#allocation21]  }
 0x160   : > { %s4608_s2 = sadd.s32 4294967294, %s3631_s28   ;;  %s4075_s9 = sadd.s32 1, %s3631_s28  }
 0x161   : > { %s113_s20 = sadd.s32 1, %s3627_s7  ;;  %s110_s18 = ssub.s32 %s3631_s28, %s4075_s9 }
 0x162   : > { %p120_p8 = scmp.ne.s32.totalorder %s3627_s7, %s3623_s3  ;;  %p111_p13 = scmp.eq.s32.totalorder %s110_s18, 0 }
 0x163   : > { %p121_p0 = scmp.eq.s32.totalorder %s3631_s28, 0  ;;  %p126_p1 = scmp.ne.s32.totalorder %s3623_s3, %s3619_s27 }
 0x164   : > { %p596_p3 = scmp.eq.s32.totalorder %s3814_s29, 1  ;;  %p4657_p5 = scmp.eq.s32.totalorder %s3814_s29, 0 }
 0x165   : > { %s4087_s23 = scalar_select %p111_p13, %s3627_s7, %s113_s20  }
 0x166   : > { %p122_p2 = por %p121_p0, %p120_p8  ;;  %p4091_p7 = por %p4657_p5, %p126_p1 }
 0x167   : > { %p4095_p6 = por %p596_p3, %p120_p8  ;;  %p602_p9 = scmp.eq.s32.totalorder %s4608_s2, 1 }
 0x168   : > { %s4658_s14 = scalar_select %p4091_p7, 1, 0 }
 0x169   : > { %s4659_s22 = scalar_select %p4095_p6, 1, 0 }
 0x16a   : > { %p2994_p4 = scmp.lt.s32.totalorder %s3631_s28, 2  ;;  %s846_s16 = sand.u32 1, %s3627_s7  }
 0x16b   : > { %p4103_p10 = por %p602_p9, %p126_p1  ;;  %s4107_s10 = sshll.u32 %s846_s16, 2 }
 0x16c   : > { %s2616_s5 = sshll.u32 %s3631_s28, 6  ;;  %s4661_s4 = sld [smem:[#allocation39_spill]] }
 0x16d   : > { %s4660_s19 = scalar_select %p4103_p10, 1, 0 }
 0x16e   : > { %s850_s25 = scalar_lea.vmem [#allocation2], %s4107_s10  ;;  %p4116_p11 = pnand %p2994_p4, %p122_p2 }
 0x16f   : > { %s857_s6 = sshll.u32 %s850_s25, 4  ;;  %s4663_s12 = sld [smem:[#allocation40_spill]]  ;;  %s4120_s6 = int_to_ptr.vmem [resolvable:$true] %s857_s6 }
 0x170   : > { %s847_s1 = scalar_lea.sflag [#allocation3], %s846_s16  ;;  %p3419_p8 = pneg %p4116_p11 }
 0x172   : > { %s4113_s8 = scalar_lea.hbm %s4661_s4, %s2616_s5  ;;  %s3422_s24 = scalar_lea.hbm %s4661_s4, 128 }
 0x173   : > { %s3417_s15 = scalar_lea.hbm %s4113_s8, 64  ;;  %p3423_p1 = scmp.lt.u32.totalorder %s4113_s8, %s4661_s4 }
 0x174   : > { %p3418_p12 = scmp.ne.s32.totalorder %s4113_s8, %s3417_s15  ;;  %p3424_p3 = scmp.lt.u32.totalorder %s3422_s24, %s3417_s15 }
 0x175   : > { %s4125_s21 = scalar_lea.hbm %s4663_s12, %s2616_s5  ;;  %p3426_p5 = scmp.lt.u32.totalorder %s3417_s15, %s4113_s8 }
 0x176   : > { %p3420_p13 = pnand %p3419_p8, %p3418_p12  ;;  %p3425_p2 = por %p3424_p3, %p3423_p1 }
 0x178   : > { %p3421_p0 = pneg %p3420_p13  ;;  %p3427_p9 = por %p3426_p5, %p3425_p2 }
 0x17a   : > { %p3428_p4 = pnand %p3427_p9, %p3421_p0 }
 0x17c   : > { %3431 = shalt.err (!%p3428_p4)
}
 0x17d   : > { %s3432_s2 = scalar_lea.vmem %s4120_s6, 64  ;;  %s3646_s17 = smov [#allocation2]  }
 0x17e   : > { %p3433_p12 = scmp.ne.s32.totalorder %s4120_s6, %s3432_s2  ;;  %s3437_s16 = sshll.u32 %s3646_s17, 4  ;;  %s3438_s16 = int_to_ptr.vmem [resolvable:$false] %s3437_s16 }
 0x17f   : > { %s3439_s26 = scalar_lea.vmem %s3438_s16, 128  ;;  %p3440_p6 = scmp.lt.s32.totalorder %s4120_s6, %s3438_s16 }
 0x180   : > { %p3435_p13 = pnand %p3433_p12, %p3419_p8  ;;  %p3441_p1 = scmp.lt.s32.totalorder %s3439_s26, %s3432_s2 }
 0x182   : > { %p3436_p10 = pneg %p3435_p13  ;;  %p3442_p3 = por %p3441_p1, %p3440_p6 }
 0x184   : > { %p3443_p2 = pnand %p3442_p3, %p3436_p10 }
 0x186   : > { %3446 = shalt.err (!%p3443_p2)
}
 0x187   : > { %2969 = dma.hbm_to_vmem [thread:$0]  (!%p4116_p11), %s4113_s8, 64, %s4120_s6, %s847_s1  }
 0x188   : > { %s864_s15 = sand.u32 1, %s3631_s28   ;;  %s868_s30 = scalar_lea.vmem [#allocation5], %s4107_s10 }
 0x189   : > { %s875_s24 = sshll.u32 %s868_s30, 4  ;;  %s865_s5 = scalar_lea.sflag [#allocation6], %s864_s15  ;;  %s876_s24 = int_to_ptr.vmem [resolvable:$true] %s875_s24 }
 0x18a   : > { %s3447_s18 = scalar_lea.hbm %s4125_s21, 64  ;;  %s3452_s17 = scalar_lea.hbm %s4663_s12, 128 }
 0x18b   : > { %p3448_p6 = scmp.ne.s32.totalorder %s4125_s21, %s3447_s18  ;;  %p3453_p5 = scmp.lt.u32.totalorder %s4125_s21, %s4663_s12 }
 0x18c   : > { %p3454_p9 = scmp.lt.u32.totalorder %s3452_s17, %s3447_s18  ;;  %p3456_p12 = scmp.lt.u32.totalorder %s3447_s18, %s4125_s21 }
 0x18d   : > { %p3450_p10 = pnand %p3448_p6, %p3419_p8 }
 0x18e   : > { %p3455_p4 = por %p3454_p9, %p3453_p5 }
 0x18f   : > { %p3451_p0 = pneg %p3450_p10 }
 0x190   : > { %p3457_p13 = por %p3456_p12, %p3455_p4 }
 0x192   : > { %p3458_p1 = pnand %p3457_p13, %p3451_p0 }
 0x194   : > { %3461 = shalt.err (!%p3458_p1)
}
 0x195   : > { %s3462_s10 = scalar_lea.vmem %s876_s24, 64  ;;  %s3647_s8 = smov [#allocation5]  }
 0x196   : > { %p3463_p3 = scmp.ne.s32.totalorder %s876_s24, %s3462_s10  ;;  %s3467_s6 = sshll.u32 %s3647_s8, 4  ;;  %s3468_s6 = int_to_ptr.vmem [resolvable:$false] %s3467_s6 }
 0x197   : > { %s3469_s1 = scalar_lea.vmem %s3468_s6, 128  ;;  %p3470_p10 = scmp.lt.s32.totalorder %s876_s24, %s3468_s6 }
 0x198   : > { %p3465_p2 = pnand %p3463_p3, %p3419_p8  ;;  %p3471_p7 = scmp.lt.s32.totalorder %s3469_s1, %s3462_s10 }
 0x19a   : > { %p3466_p6 = pneg %p3465_p2  ;;  %p3472_p5 = por %p3471_p7, %p3470_p10 }
 0x19c   : > { %p3473_p9 = pnand %p3472_p5, %p3466_p6 }
 0x19e   : > { %3476 = shalt.err (!%p3473_p9)
}
 0x19f   : > { %2972 = dma.hbm_to_vmem [thread:$0]  (!%p4116_p11), %s4125_s21, 64, %s876_s24, %s865_s5  }
 0x1a0   : > { %p4664_p0 = scmp.ne.s32.totalorder %s4641_s0, 0 }
 0x1a1   : > { %s4176_s15 = sand.u32 (!%p4664_p0), 1, %s3623_s3   ;;  %p4665_p7 = scmp.ne.s32.totalorder (!%p4664_p0), %s4658_s14, 0 }
 0x1a2   : > { %884 = sbr.rel (%p4664_p0) target bundleno = 4718 (0x126e), region = 116  ;;  %s2620_s30 = sshll.u32 (!%p4664_p0), %s4176_s15, 2 }
 0x1a3   : > { %s887_s18 = scalar_lea.sflag (!%p4664_p0), [#allocation3], %s4176_s15  ;;  %s4180_s25 = scalar_lea.vmem (!%p4664_p0), [#allocation2], %s2620_s30 }
 0x1a9   : > { %3578 = dma.done.wait (%p4665_p7), %s887_s18, 64  }
 0x1aa   : > { %3580 = vsyncadd (%p4665_p7), %s887_s18, 4294967232  ;;  %s895_s0 = sand.u32 1, %s3814_s29   ;;  %s4189_s21 = scalar_lea.vmem [#allocation5], %s2620_s30 }
 0x1ab   : > { %s896_s20 = scalar_lea.sflag [#allocation6], %s895_s0 }
 0x1ac   : > { %3582 = dma.done.wait (%p4665_p7), %s896_s20, 64  }
 0x1ad   : > { %3584 = vsyncadd (%p4665_p7), %s896_s20, 4294967232  ;;  %p4666_p11 = scmp.eq.s32.totalorder %s3814_s29, 0 }
 0x1af   : > { %3586 = dma.done.wait (%p4666_p11), [#allocation6], 256   ;;  %p4667_p8 = pmov %p4666_p11 }
 0x1b1   : > { %3588 = vsyncadd (%p4667_p8), [#allocation6], 4294967040  ;;  %p4668_p4 = pmov %p4667_p8 }
 0x1b3   : > { %3590 = dma.done.wait (%p4668_p4), [#allocation9], 512   ;;  %p4669_p12 = pmov %p4668_p4 }
 0x1b4   : > { %p4670_p13 = pmov %p4668_p4 }
 0x1b5   : > { %3592 = vsyncadd (%p4669_p12), [#allocation9], 4294966784 }
 0x1b6   : > { %3594 = dma.done.wait (%p4670_p13), [#allocation12], 32   ;;  %p4671_p1 = pmov %p4668_p4 }
 0x1b8   : > { %3596 = vsyncadd (%p4671_p1), [#allocation12], 4294967264  ;;  %p4672_p3 = pmov %p4671_p1 }
 0x1b9   : > { %p4673_p2 = pmov %p4671_p1 }
 0x1ba   : > { %3598 = dma.done.wait (%p4672_p3), [#allocation15], 272  }
 0x1bb   : > { %3600 = vsyncadd (%p4673_p2), [#allocation15], 4294967024  ;;  %p4674_p6 = pmov %p4671_p1 }
 0x1bc   : > { %p4675_p10 = pmov %p4671_p1 }
 0x1bd   : > { %3602 = dma.done.wait (%p4674_p6), [#allocation18], 272  }
 0x1be   : > { %3604 = vsyncadd (%p4675_p10), [#allocation18], 4294967024  ;;  %p4676_p5 = pmov %p4671_p1 }
 0x1bf   : > { %p4677_p9 = pmov %p4671_p1 }
 0x1c0   : > { %3606 = dma.done.wait (%p4676_p5), [#allocation21], 32  }
 0x1c1   : > { %3608 = vsyncadd (%p4677_p9), [#allocation21], 4294967264  ;;  %p1035_p0 = scmp.lt.s32.totalorder %s3814_s29, 1  ;;  %v3648_v0 = vmov 0.0   ;;  %vm3649_vm0 = vmmov 0   ;;  %v3059_v1 = vld [vmem:[#allocation7] sm:$0xff]  }
 0x1c2   : > { %2754 = vmatprep.subr.bf16.mxu1 %v3648_v0  ;;  %2746 = vmatprep.subr.bf16.mxu0 %v3648_v0  ;;  %s4678_s17 = sld [smem:[#allocation37_spill]]  ;;  %v3060_v2 = vld [vmem:[#allocation7 + $0x8] sm:$0xff]   ;;  %s4679_s8 = sld [smem:[#allocation41_spill]]  ;;  %vm1082_vm1 = vcmask 261120   ;;  %vm1232_vm2 = vcmask 130048   ;;  %v3063_v18 = vld [vmem:[#allocation8] sm:$0xff]  }
 0x1c3   : > { %2758 = vmatprep.mubr.msk.bf16.mxu1 %vm3649_vm0, %v3648_v0  ;;  %s4225_s14 = scalar_select %p1035_p0, %s3814_s29, 1  ;;  %2750 = vmatprep.mubr.msk.bf16.mxu0 %vm3649_vm0, %v3648_v0  ;;  %v3064_v19 = vld [vmem:[#allocation8 + $0x8] sm:$0xff]   ;;  %v1046_v23 = vld [vmem:[%s4180_s25] sm:$0xf]  ;;  %vm1281_vm3 = vcmask 64512   ;;  %vm1299_vm4 = vcmask 1043456  }
 0x1c4   : > { %2755 = vmatpush3.bf16.msra.mxu1 %v3059_v1  ;;  %s3650_s30 = smov 112   ;;  %v1047_v24 = vunpack.c.l.bf16 %v1046_v23  ;;  %s2634_s18 = sshll.u32 %s4176_s15, 4  ;;  %vm2183_vm9 = vcmask 523264  }
 0x1c5   : > { %s2636_s24 = sshll.u32 %s4225_s14, 3  ;;  %2756 = vmatprep.subr.bf16.mxu1 %v3648_v0  ;;  %s4283_s25 = scalar_lea.vmem [#allocation24], %s2634_s18 }
 0x1c6   : > { %s3651_s20 = smov 16   ;;  %s4682_s6 = sld [smem:[#allocation55_spill]] }
 0x1c7   : > { %s4684_s1 = sld [smem:[#allocation56_spill]]  ;;  %s4425_s14 = sshll.u32 %s3814_s29, 7 }
 0x1c8   : > { %s1038_s16 = scalar_lea.vmem %s4678_s17, %s2636_s24  ;;  %v3061_v3 = vld [vmem:[%s4679_s8] sm:$0xff]   ;;  %v3062_v5 = vld [vmem:[%s4679_s8 + $0x8] sm:$0xff]   ;;  %2757 = vmatpush3.bf16.msra.mxu1 %v3060_v2  ;;  %v3065_v2 = vld [vmem:[#allocation10] sm:$0xff]   ;;  %s4680_s17 = sld [smem:[#allocation38_spill]] }
 0x1c9   : > { %v4239_v4 = vld [vmem:[%s1038_s16] sm:$0xff]  ;;  %2747 = vmatpush3.bf16.msra.mxu0 %v3061_v3  ;;  %2770 = vmatprep.subr.bf16.mxu1 %v3648_v0  ;;  %s4685_s2 = sld [smem:[#allocation60_spill]]  ;;  %p4686_p11 = scmp.ne.s32.totalorder %s4659_s22, 0 }
 0x1ca   : > { %v1069_v6 = vpack.c.bf16 %v4239_v4, %v4239_v4  ;;  %2748 = vmatprep.subr.bf16.mxu0 %v3648_v0  ;;  %s3652_s26 = smov [#allocation24]  }
 0x1cb   : > { %s3481_s10 = sshll.u32 %s3652_s26, 4  ;;  %s3482_s10 = int_to_ptr.vmem [resolvable:$false] %s3481_s10 }
 0x1cc   : > { %2759 = vmatmul.mubr.msk.bf16.vlgmr.msra.gmra.mrb[0].mxu1 %vm1082_vm1, %v1069_v6 }
 0x1cd   : > { %2749 = vmatpush3.bf16.msra.mxu0 %v3062_v5  ;;  %2772 = vmatprep.mubr.msk.bf16.mxu1 %vm3649_vm0, %v3648_v0 }
 0x1ce   : > { %2762 = vmatprep.subr.bf16.mxu0 %v3648_v0  ;;  %s1042_s16 = scalar_lea.vmem %s4680_s17, %s2636_s24  ;;  %s4438_s17 = scalar_lea.sflag [#allocation25], %s895_s0 }
 0x1d0   : > { %2751 = vmatmul.mubr.msk.bf16.vlgmr.msra.gmra.mrb[0].mxu0 %vm1082_vm1, %v1069_v6 }
 0x1d1   : > { %2766 = vmatprep.mubr.msk.bf16.mxu0 %vm3649_vm0, %v3648_v0  ;;  %2763 = vmatpush3.bf16.msra.mxu0 %v3063_v18 }
 0x1d2   : > { %2764 = vmatprep.subr.bf16.mxu0 %v3648_v0 }
 0x1d5   : > { %2765 = vmatpush3.bf16.msra.mxu0 %v3064_v19 }
 0x1d6   : > { %2776 = vmatprep.subr.bf16.mxu0 %v3648_v0 }
 0x1d8   : > { %2767 = vmatmul.mubr.msk.bf16.vlgmr.msra.gmra.mrb[4].mxu0 %vm1082_vm1, %v1069_v6 }
 0x1d9   : > { %2778 = vmatprep.mubr.msk.bf16.mxu0 %vm3649_vm0, %v3648_v0 }
 0x29f   : > { %v1172_v7 = vpop.f32.mrb[0].mxu1 }
 0x2a0   : > { %v1231_v8 = vpack.c.bf16 %v1172_v7, %v1172_v7  ;;  %v2760_v9 = vpop.f32.mrb[1].mxu1 }
 0x2a1   : > { %v1175_v10 = vpop.f32.mrb[2].mxu1 }
 0x2a2   : > { %v1237_v12 = vsel %vm1232_vm2, %v1231_v8, 0  ;;  %1347 = vrot.lane.b32.xlu0 %v1231_v8, %s3650_s30  ;;  %v2761_v13 = vpop.f32.mrb[3].mxu1  ;;  %v3066_v8 = vld [vmem:[#allocation10 + $0x8] sm:$0xff]  }
 0x2a3   : > { %v1120_v11 = vpop.f32.mrb[0].mxu0  ;;  %2771 = vmatpush3.bf16.xpose.msra.mxu1 %v1237_v12 }
 0x2a4   : > { %v1230_v14 = vpack.c.bf16 %v1120_v11, %v1120_v11  ;;  %v2752_v15 = vpop.f32.mrb[1].mxu0  ;;  %2782 = vmatprep.subr.bf16.mxu1 %v3648_v0 }
 0x2a5   : > { %v1123_v16 = vpop.f32.mrb[2].mxu0 }
 0x2a6   : > { %v2753_v17 = vpop.f32.mrb[3].mxu0  ;;  %1344 = vrot.lane.b32.xlu0 %v1230_v14, %s3650_s30  ;;  %v2652_v16 = vld [vmem:[#allocation11] ss:$0 sm:$0xff] }
 0x2aa   : > { %2773 = vmatmul.mubr.msk.bf16.vlgmr.msra.gmra.mrb[4].mxu1 %vm1232_vm2, %v1230_v14 }
 0x2ab   : > { %2784 = vmatprep.mubr.msk.bf16.mxu1 %vm3649_vm0, %v3648_v0  ;;  %v1224_v44 = vpop.f32.mrb[4].mxu0 }
 0x2ac   : > { %v2768_v45 = vpop.f32.mrb[5].mxu0  ;;  %v1295_v48 = vpack.c.bf16 %v1224_v44, %v1224_v44 }
 0x2ad   : > { %v1227_v46 = vpop.f32.mrb[6].mxu0  ;;  %v2657_v45 = vld [vmem:[#allocation14] ss:$0 sm:$0xff] }
 0x2ae   : > { %v2769_v47 = vpop.f32.mrb[7].mxu0  ;;  %v1301_v49 = vsel %vm1299_vm4, %v1295_v48, 0 }
 0x2af   : > { %2777 = vmatpush3.bf16.msra.mxu0 %v1301_v49 }
 0x2b0   : > { %2788 = vmatprep.subr.bf16.mxu0 %v3648_v0 }
 0x314   : > { %v1348_v20 = vpop.permute.xlu0 %1347 }
 0x315   : > { %v1353_v21 = vsel %vm1232_vm2, %v1348_v20, 0 }
 0x316   : > { %2783 = vmatpush3.bf16.xpose.msra.mxu1 %v1353_v21 }
 0x317   : > { %2794 = vmatprep.subr.bf16.mxu1 %v3648_v0 }
 0x318   : > { %v1345_v22 = vpop.permute.xlu0 %1344 }
 0x31d   : > { %2785 = vmatmul.mubr.msk.bf16.vlgmr.msra.gmra.mrb[8].mxu1 %vm1232_vm2, %v1345_v22 }
 0x31e   : > { %2798 = vmatprep.mubr.msk.bf16.mxu1 %vm3649_vm0, %v3648_v0  ;;  %2795 = vmatpush3.bf16.msra.mxu1 %v3065_v2  ;;  %v1048_v2 = vld [vmem:[%s4189_s21] sm:$0xf]  ;;  %s4365_s21 = scalar_lea.vmem [#allocation26], %s2634_s18  ;;  %s2301_s18 = sshll.u32 %s4283_s25, 4  ;;  %s4434_s18 = int_to_ptr.vmem [resolvable:$true] %s2301_s18 }
 0x31f   : > { %2796 = vmatprep.subr.bf16.mxu1 %v3648_v0  ;;  %p3484_p12 = scmp.lt.s32.totalorder %s4434_s18, %s3482_s10 }
 0x322   : > { %2797 = vmatpush3.bf16.msra.mxu1 %v3066_v8 }
 0x323   : > { %2810 = vmatprep.subr.bf16.mxu1 %v3648_v0 }
 0x37d   : > { %v1273_v25 = vpop.f32.mrb[4].mxu1 }
 0x37e   : > { %v1279_v26 = vmul.f32 0.17677669, %v1273_v25  ;;  %v2774_v27 = vpop.f32.mrb[5].mxu1 }
 0x37f   : > { %v1276_v28 = vpop.f32.mrb[6].mxu1 }
 0x380   : > { %v2775_v29 = vpop.f32.mrb[7].mxu1  ;;  %v1280_v30 = vadd.f32 %v1279_v26, %v1047_v24 }
 0x381   : > { %v3067_v29 = vld [vmem:[#allocation16] sm:$0xff]  }
 0x382   : > { %v1282_v31 = vsel %vm1281_vm3, %v1280_v30, -inf }
 0x383   : > { %1283 = vmax.xlane.f32.xlu1 %v1282_v31  ;;  %v1045_v31 = vld [vmem:[%s1042_s16] sm:$0xff]  ;;  %s4683_s16 = sld [smem:[#allocation54_spill]] }
 0x3f0   : > { %v1389_v32 = vpop.f32.mrb[8].mxu1 }
 0x3f1   : > { %v1395_v33 = vmul.f32 0.17677669, %v1389_v32  ;;  %v2786_v34 = vpop.f32.mrb[9].mxu1  ;;  %v3070_v32 = vld [vmem:[%s4569_s11 + $0x8] sm:$0xff]  }
 0x3f2   : > { %v1392_v35 = vpop.f32.mrb[10].mxu1 }
 0x3f3   : > { %v2787_v36 = vpop.f32.mrb[11].mxu1  ;;  %v1396_v37 = vadd.f32 %v1395_v33, %v1047_v24  ;;  %v1583_v33 = vpack.c.bf16 %v1045_v31, %v1045_v31 }
 0x3f5   : > { %v1397_v38 = vsel %vm1281_vm3, %v1396_v37, -inf }
 0x3f6   : > { %1398 = vmax.xlane.f32.xlu1 %v1397_v38 }
 0x410   : > { %v1284_v39 = vpop.xlane.xlu1 %1283 }
 0x411   : > { %v1285_v40 = vsub.f32 %v1280_v30, %v1284_v39  ;;  %v3068_v30 = vld [vmem:[#allocation16 + $0x8] sm:$0xff]  }
 0x413   : > { %v1286_v41 = vmul.f32 1.442695, %v1285_v40 }
 0x415   : > { %3081 = vpow2.f32 %v1286_v41 }
 0x41f   : > { %v3082_v42 = vpop.eup %3081 }
 0x420   : > { %v1288_v43 = vsel %vm1281_vm3, %v3082_v42, 0.0 }
 0x421   : > { %1289 = vadd.xlane.f32.xlu0 %v1288_v43  ;;  %v2656_v43 = vld [vmem:[#allocation13] ss:$0 sm:$0xff] }
 0x483   : > { %v1399_v50 = vpop.xlane.xlu1 %1398 }
 0x484   : > { %v1400_v51 = vsub.f32 %v1396_v37, %v1399_v50 }
 0x486   : > { %v1401_v52 = vmul.f32 1.442695, %v1400_v51 }
 0x488   : > { %3083 = vpow2.f32 %v1401_v52 }
 0x492   : > { %v3084_v53 = vpop.eup %3083 }
 0x493   : > { %v1403_v54 = vsel %vm1281_vm3, %v3084_v53, 0.0 }
 0x494   : > { %1404 = vadd.xlane.f32.xlu1 %v1403_v54 }
 0x4a5   : > { %1412 = vrot.lane.b32.xlu1 %v1295_v48, %s3650_s30 }
 0x4ae   : > { %v1290_v55 = vpop.xlane.xlu0 %1289 }
 0x4af   : > { %3085 = vrcp.f32 %v1290_v55 }
 0x4b9   : > { %v3086_v56 = vpop.eup %3085 }
 0x4ba   : > { %v1292_v57 = vmul.f32 %v3086_v56, %v3082_v42 }
 0x4bc   : > { %1293 = vst.msk [vmem:[%s4283_s25] sm:$0xff] %vm1281_vm3, %v1292_v57  ;;  %v1294_v58 = vpack.c.bf16 %v1292_v57, %v1292_v57 }
 0x4be   : > { %2779 = vmatmul.mubr.msk.bf16.vlgmr.msra.gmra.mrb[8].mxu0 %vm1281_vm3, %v1294_v58 }
 0x4bf   : > { %2790 = vmatprep.mubr.msk.bf16.mxu0 %vm3649_vm0, %v3648_v0 }
 0x521   : > { %v1405_v59 = vpop.xlane.xlu1 %1404 }
 0x522   : > { %3087 = vrcp.f32 %v1405_v59 }
 0x525   : > { %v1413_v60 = vpop.permute.xlu1 %1412 }
 0x526   : > { %v1418_v61 = vsel %vm1299_vm4, %v1413_v60, 0 }
 0x527   : > { %2789 = vmatpush3.bf16.msra.mxu0 %v1418_v61 }
 0x528   : > { %2802 = vmatprep.subr.bf16.mxu0 %v3648_v0 }
 0x52c   : > { %v3088_v62 = vpop.eup %3087 }
 0x52d   : > { %v1407_v63 = vmul.f32 %v3088_v62, %v3084_v53  ;;  %v3071_v62 = vld [vmem:[%s4571_s13] sm:$0xff]  }
 0x52f   : > { %2650 = vst.msk [vmem:[%s4283_s25 + $0x8] sm:$0xff] %vm1281_vm3, %v1407_v63  ;;  %v1410_v1 = vpack.c.bf16 %v1407_v63, %v1407_v63  ;;  %v3072_v63 = vld [vmem:[%s4571_s13 + $0x8] sm:$0xff]  }
 0x531   : > { %2791 = vmatmul.mubr.msk.bf16.vlgmr.msra.gmra.mrb[12].mxu0 %vm1281_vm3, %v1410_v1 }
 0x532   : > { %2806 = vmatprep.mubr.msk.bf16.mxu0 %vm3649_vm0, %v3648_v0 }
 0x591   : > { %v1337_v3 = vpop.f32.mrb[8].mxu0 }
 0x592   : > { %v2780_v5 = vpop.f32.mrb[9].mxu0 }
 0x593   : > { %v1340_v6 = vpop.f32.mrb[10].mxu0 }
 0x594   : > { %v2781_v7 = vpop.f32.mrb[11].mxu0 }
 0x604   : > { %v1454_v9 = vpop.f32.mrb[12].mxu0 }
 0x605   : > { %1461 = vrot.lane.b32.xlu1 %v1454_v9, %s3651_s20  ;;  %v2792_v10 = vpop.f32.mrb[13].mxu0 }
 0x606   : > { %v1457_v11 = vpop.f32.mrb[14].mxu0 }
 0x607   : > { %v2793_v12 = vpop.f32.mrb[15].mxu0 }
 0x677   : > { %v1462_v13 = vpop.permute.xlu1 %1461 }
 0x678   : > { %v1464_v14 = vsel %vm1232_vm2, %v1337_v3, %v1462_v13  ;;  %v1049_v3 = vunpack.c.l.bf16 %v1048_v2 }
 0x679   : > { %v1465_v15 = vpack.c.bf16 %v1464_v14, %v1464_v14 }
 0x67b   : > { %2799 = vmatmul.mubr.msk.bf16.vlgmr.msra.gmra.mrb[12].mxu1 %vm1082_vm1, %v1465_v15 }
 0x67c   : > { %2814 = vmatprep.mubr.msk.bf16.mxu1 %vm3649_vm0, %v3648_v0  ;;  %2811 = vmatpush3.bf16.msra.mxu1 %v3067_v29 }
 0x67d   : > { %2812 = vmatprep.subr.bf16.mxu1 %v3648_v0 }
 0x680   : > { %2813 = vmatpush3.bf16.msra.mxu1 %v3068_v30 }
 0x681   : > { %2826 = vmatprep.subr.bf16.mxu1 %v3648_v0 }
 0x683   : > { %2815 = vmatmul.mubr.msk.bf16.vlgmr.msra.gmra.mrb[16].mxu1 %vm1082_vm1, %v1583_v33 }
 0x684   : > { %2828 = vmatprep.mubr.msk.bf16.mxu1 %vm3649_vm0, %v3648_v0 }
 0x74e   : > { %v1521_v17 = vpop.f32.mrb[12].mxu1 }
 0x74f   : > { %v1522_v18 = vadd.f32 %v2652_v16, %v1521_v17  ;;  %v2800_v19 = vpop.f32.mrb[13].mxu1 }
 0x750   : > { %v1524_v20 = vpop.f32.mrb[14].mxu1 }
 0x751   : > { %v2801_v21 = vpop.f32.mrb[15].mxu1  ;;  %v1527_v22 = vadd.f32 %v1522_v18, %v4239_v4  ;;  %v3069_v4 = vld [vmem:[%s4569_s11] sm:$0xff]  }
 0x752   : > { %2803 = vmatpush3.bf16.msra.mxu0 %v3069_v4 }
 0x753   : > { %v1528_v23 = vsel %vm1082_vm1, %v1527_v22, 0.0  ;;  %2804 = vmatprep.subr.bf16.mxu0 %v3648_v0 }
 0x754   : > { %1529 = vadd.xlane.f32.xlu1 %v1528_v23 }
 0x756   : > { %2805 = vmatpush3.bf16.msra.mxu0 %v3070_v32  ;;  %v1688_v49 = vpop.f32.mrb[16].mxu1 }
 0x757   : > { %2818 = vmatprep.subr.bf16.mxu0 %v3648_v0  ;;  %v1747_v50 = vpack.c.bf16 %v1688_v49, %v1688_v49  ;;  %v2816_v51 = vpop.f32.mrb[17].mxu1 }
 0x758   : > { %v1691_v52 = vpop.f32.mrb[18].mxu1 }
 0x759   : > { %v1752_v53 = vsel %vm1232_vm2, %v1747_v50, 0  ;;  %v2817_v54 = vpop.f32.mrb[19].mxu1 }
 0x75a   : > { %2827 = vmatpush3.bf16.xpose.msra.mxu1 %v1752_v53 }
 0x75b   : > { %2838 = vmatprep.subr.bf16.mxu1 %v3648_v0 }
 0x7e1   : > { %v1530_v24 = vpop.xlane.xlu1 %1529 }
 0x7e2   : > { %v1532_v25 = vmul.f32 0.03125, %v1530_v24 }
 0x7e4   : > { %v1533_v26 = vsub.f32 %v1527_v22, %v1532_v25 }
 0x7e6   : > { %v1534_v27 = vmul.f32 %v1533_v26, %v1533_v26 }
 0x7e8   : > { %v1535_v28 = vsel %vm1082_vm1, %v1534_v27, 0.0 }
 0x7e9   : > { %1536 = vadd.xlane.f32.xlu0 %v1535_v28 }
 0x7ff   : > { %1860 = vrot.lane.b32.xlu0 %v1747_v50, %s3650_s30  ;;  %v3074_v50 = vld [vmem:[#allocation17 + $0x8] sm:$0xff]  }
 0x876   : > { %v1537_v34 = vpop.xlane.xlu0 %1536 }
 0x877   : > { %v1538_v35 = vmul.f32 0.032258064, %v1537_v34 }
 0x879   : > { %3089 = vrsqrt.f32 %v1538_v35  ;;  %vm1541_vm5 = vcmp.eq.f32.partialorder %v1538_v35, inf  ;;  %v1544_v38 = vand.u32 2147483648, %v1538_v35  ;;  %vm1543_vm6 = vcmp.eq.f32.partialorder %v1538_v35, 0.0 }
 0x87a   : > { %v1861_v55 = vpop.permute.xlu0 %1860 }
 0x87b   : > { %v1866_v59 = vsel %vm1232_vm2, %v1861_v55, 0 }
 0x883   : > { %v3090_v36 = vpop.eup %3089 }
 0x884   : > { %v1540_v37 = vmul.f32 %v3090_v36, %v1538_v35 }
 0x886   : > { %v1542_v39 = vsel %vm1541_vm5, %v1538_v35, %v1540_v37 }
 0x887   : > { %v1545_v40 = vsel %vm1543_vm6, %v1544_v38, %v1542_v39 }
 0x888   : > { %v1546_v41 = vadd.f32 0.001, %v1545_v40 }
 0x88a   : > { %3091 = vrcp.f32 %v1546_v41 }
 0x894   : > { %v3092_v42 = vpop.eup %3091 }
 0x895   : > { %v1548_v44 = vmul.f32 %v3092_v42, %v1533_v26 }
 0x897   : > { %v1555_v46 = vmul.f32 %v2656_v43, %v1548_v44  ;;  %v3073_v44 = vld [vmem:[#allocation17] sm:$0xff]  }
 0x899   : > { %v4325_v47 = vadd.f32 %v2657_v45, %v1555_v46 }
 0x89b   : > { %v1582_v48 = vpack.c.bf16 %v4325_v47, %v4325_v47 }
 0x89d   : > { %2807 = vmatmul.mubr.msk.bf16.vlgmr.msra.gmra.mrb[16].mxu0 %vm1082_vm1, %v1582_v48 }
 0x89e   : > { %2822 = vmatprep.mubr.msk.bf16.mxu0 %vm3649_vm0, %v3648_v0  ;;  %2819 = vmatpush3.bf16.msra.mxu0 %v3071_v62 }
 0x89f   : > { %2820 = vmatprep.subr.bf16.mxu0 %v3648_v0 }
 0x8a2   : > { %2821 = vmatpush3.bf16.msra.mxu0 %v3072_v63 }
 0x8a3   : > { %2832 = vmatprep.subr.bf16.mxu0 %v3648_v0 }
 0x8a5   : > { %2823 = vmatmul.mubr.msk.bf16.vlgmr.msra.gmra.mrb[20].mxu0 %vm1082_vm1, %v1583_v33 }
 0x8a6   : > { %2834 = vmatprep.mubr.msk.bf16.mxu0 %vm3649_vm0, %v3648_v0 }
 0x970   : > { %v1633_v56 = vpop.f32.mrb[16].mxu0 }
 0x971   : > { %v1746_v57 = vpack.c.bf16 %v1633_v56, %v1633_v56  ;;  %v2808_v58 = vpop.f32.mrb[17].mxu0 }
 0x972   : > { %v1636_v60 = vpop.f32.mrb[18].mxu0  ;;  %v2672_v58 = vld [vmem:[#allocation19] ss:$0 sm:$0xff] }
 0x973   : > { %1857 = vrot.lane.b32.xlu0 %v1746_v57, %s3650_s30  ;;  %v2809_v61 = vpop.f32.mrb[19].mxu0  ;;  %2829 = vmatmul.mubr.msk.bf16.vlgmr.msra.gmra.mrb[20].mxu1 %vm1232_vm2, %v1746_v57 }
 0x974   : > { %2839 = vmatpush3.bf16.xpose.msra.mxu1 %v1866_v59  ;;  %2840 = vmatprep.mubr.msk.bf16.mxu1 %vm3649_vm0, %v3648_v0 }
 0x975   : > { %2850 = vmatprep.subr.bf16.mxu1 %v3648_v0 }
 0x978   : > { %v1740_v24 = vpop.f32.mrb[20].mxu0 }
 0x979   : > { %v2824_v25 = vpop.f32.mrb[21].mxu0  ;;  %v1809_v28 = vpack.c.bf16 %v1740_v24, %v1740_v24 }
 0x97a   : > { %v1743_v26 = vpop.f32.mrb[22].mxu0 }
 0x97b   : > { %v2825_v27 = vpop.f32.mrb[23].mxu0  ;;  %v1814_v29 = vsel %vm1299_vm4, %v1809_v28, 0 }
 0x97c   : > { %2833 = vmatpush3.bf16.msra.mxu0 %v1814_v29  ;;  %v3079_v27 = vld [vmem:[%s4682_s6 + $0x10] sm:$0xff]   ;;  %v2678_v29 = vld [vmem:[%s4683_s16] ss:$0 sm:$0xff]  ;;  %s3477_s16 = scalar_lea.vmem %s4434_s18, 256 }
 0x97d   : > { %2844 = vmatprep.subr.bf16.mxu0 %v3648_v0  ;;  %p3478_p7 = scmp.ne.s32.totalorder %s4434_s18, %s3477_s16 }
 0x97f   : > { %p3479_p8 = pnand %p3478_p7, %p4686_p11 }
 0x981   : > { %p3480_p4 = pneg %p3479_p8 }
 0x9e5   : > { %v1858_v1 = vpop.permute.xlu0 %1857 }
 0x9e6   : > { %2841 = vmatmul.mubr.msk.bf16.vlgmr.msra.gmra.mrb[24].mxu1 %vm1232_vm2, %v1858_v1 }
 0x9e7   : > { %2854 = vmatprep.mubr.msk.bf16.mxu1 %vm3649_vm0, %v3648_v0  ;;  %2851 = vmatpush3.bf16.msra.mxu1 %v3073_v44 }
 0x9e8   : > { %2852 = vmatprep.subr.bf16.mxu1 %v3648_v0 }
 0x9eb   : > { %2853 = vmatpush3.bf16.msra.mxu1 %v3074_v50 }
 0x9ec   : > { %2866 = vmatprep.subr.bf16.mxu1 %v3648_v0 }
 0xa46   : > { %v1788_v5 = vpop.f32.mrb[20].mxu1 }
 0xa47   : > { %v1794_v6 = vmul.f32 0.17677669, %v1788_v5  ;;  %v2830_v7 = vpop.f32.mrb[21].mxu1 }
 0xa48   : > { %v1791_v8 = vpop.f32.mrb[22].mxu1 }
 0xa49   : > { %v2831_v9 = vpop.f32.mrb[23].mxu1  ;;  %v1795_v10 = vadd.f32 %v1794_v6, %v1049_v3 }
 0xa4b   : > { %v1796_v11 = vsel %vm1281_vm3, %v1795_v10, -inf }
 0xa4c   : > { %1797 = vmax.xlane.f32.xlu0 %v1796_v11  ;;  %v3078_v11 = vld [vmem:[%s4682_s6 + $0x8] sm:$0xff]  }
 0xab9   : > { %v1902_v12 = vpop.f32.mrb[24].mxu1 }
 0xaba   : > { %v1908_v13 = vmul.f32 0.17677669, %v1902_v12  ;;  %v2842_v14 = vpop.f32.mrb[25].mxu1 }
 0xabb   : > { %v1905_v15 = vpop.f32.mrb[26].mxu1 }
 0xabc   : > { %v2843_v16 = vpop.f32.mrb[27].mxu1  ;;  %v1909_v17 = vadd.f32 %v1908_v13, %v1049_v3 }
 0xabe   : > { %v1910_v18 = vsel %vm1281_vm3, %v1909_v17, -inf }
 0xabf   : > { %1911 = vmax.xlane.f32.xlu1 %v1910_v18 }
 0xad9   : > { %v1798_v19 = vpop.xlane.xlu0 %1797 }
 0xada   : > { %v1799_v20 = vsub.f32 %v1795_v10, %v1798_v19 }
 0xadc   : > { %v1800_v21 = vmul.f32 1.442695, %v1799_v20 }
 0xade   : > { %3093 = vpow2.f32 %v1800_v21  ;;  %v2676_v21 = vld [vmem:[#allocation20] ss:$0 sm:$0xff] }
 0xae8   : > { %v3094_v22 = vpop.eup %3093 }
 0xae9   : > { %v1802_v23 = vsel %vm1281_vm3, %v3094_v22, 0.0 }
 0xaea   : > { %1803 = vadd.xlane.f32.xlu1 %v1802_v23  ;;  %v2677_v23 = vld [vmem:[#allocation22] ss:$0 sm:$0xff] }
 0xb4c   : > { %v1912_v4 = vpop.xlane.xlu1 %1911 }
 0xb4d   : > { %v1913_v30 = vsub.f32 %v1909_v17, %v1912_v4 }
 0xb4f   : > { %v1914_v31 = vmul.f32 1.442695, %v1913_v30 }
 0xb51   : > { %3095 = vpow2.f32 %v1914_v31 }
 0xb5b   : > { %v3096_v32 = vpop.eup %3095 }
 0xb5c   : > { %v1916_v33 = vsel %vm1281_vm3, %v3096_v32, 0.0 }
 0xb5d   : > { %1917 = vadd.xlane.f32.xlu1 %v1916_v33 }
 0xb6e   : > { %1925 = vrot.lane.b32.xlu1 %v1809_v28, %s3650_s30  ;;  %v3080_v28 = vld [vmem:[%s4682_s6 + $0x18] sm:$0xff]   ;;  %s4431_s30 = scalar_lea.hbm %s4685_s2, %s4425_s14 }
 0xb77   : > { %v1804_v34 = vpop.xlane.xlu1 %1803 }
 0xb78   : > { %3097 = vrcp.f32 %v1804_v34 }
 0xb82   : > { %v3098_v35 = vpop.eup %3097 }
 0xb83   : > { %v1806_v36 = vmul.f32 %v3098_v35, %v3094_v22 }
 0xb85   : > { %1807 = vst.msk [vmem:[%s4365_s21] sm:$0xff] %vm1281_vm3, %v1806_v36  ;;  %v1808_v37 = vpack.c.bf16 %v1806_v36, %v1806_v36 }
 0xb87   : > { %2835 = vmatmul.mubr.msk.bf16.vlgmr.msra.gmra.mrb[24].mxu0 %vm1281_vm3, %v1808_v37 }
 0xb88   : > { %2846 = vmatprep.mubr.msk.bf16.mxu0 %vm3649_vm0, %v3648_v0 }
 0xbea   : > { %v1918_v38 = vpop.xlane.xlu1 %1917 }
 0xbeb   : > { %3099 = vrcp.f32 %v1918_v38 }
 0xbee   : > { %v1926_v39 = vpop.permute.xlu1 %1925 }
 0xbef   : > { %v1931_v40 = vsel %vm1299_vm4, %v1926_v39, 0 }
 0xbf0   : > { %2845 = vmatpush3.bf16.msra.mxu0 %v1931_v40 }
 0xbf1   : > { %2858 = vmatprep.subr.bf16.mxu0 %v3648_v0 }
 0xbf5   : > { %v3100_v41 = vpop.eup %3099 }
 0xbf6   : > { %v1920_v42 = vmul.f32 %v3100_v41, %v3096_v32 }
 0xbf8   : > { %2670 = vst.msk [vmem:[%s4365_s21 + $0x8] sm:$0xff] %vm1281_vm3, %v1920_v42  ;;  %v1923_v43 = vpack.c.bf16 %v1920_v42, %v1920_v42 }
 0xbfa   : > { %2847 = vmatmul.mubr.msk.bf16.vlgmr.msra.gmra.mrb[28].mxu0 %vm1281_vm3, %v1923_v43 }
 0xbfb   : > { %2862 = vmatprep.mubr.msk.bf16.mxu0 %vm3649_vm0, %v3648_v0 }
 0xc5a   : > { %v1850_v45 = vpop.f32.mrb[24].mxu0 }
 0xc5b   : > { %v2836_v46 = vpop.f32.mrb[25].mxu0 }
 0xc5c   : > { %v1853_v48 = vpop.f32.mrb[26].mxu0 }
 0xc5d   : > { %v2837_v49 = vpop.f32.mrb[27].mxu0 }
 0xccd   : > { %v1967_v51 = vpop.f32.mrb[28].mxu0 }
 0xcce   : > { %1974 = vrot.lane.b32.xlu1 %v1967_v51, %s3651_s20  ;;  %v2848_v52 = vpop.f32.mrb[29].mxu0  ;;  %s4681_s20 = sld [smem:[#allocation53_spill]] }
 0xccf   : > { %v1970_v53 = vpop.f32.mrb[30].mxu0 }
 0xcd0   : > { %v2849_v54 = vpop.f32.mrb[31].mxu0 }
 0xcd4   : > { %v3075_v9 = vld [vmem:[%s4681_s20] sm:$0xff]   ;;  %v3076_v10 = vld [vmem:[%s4681_s20 + $0x8] sm:$0xff]  }
 0xcd5   : > { %2859 = vmatpush3.bf16.msra.mxu0 %v3075_v9 }
 0xcd6   : > { %2860 = vmatprep.subr.bf16.mxu0 %v3648_v0 }
 0xcd9   : > { %2861 = vmatpush3.bf16.msra.mxu0 %v3076_v10 }
 0xd40   : > { %v1975_v55 = vpop.permute.xlu1 %1974 }
 0xd41   : > { %v1977_v56 = vsel %vm1232_vm2, %v1850_v45, %v1975_v55 }
 0xd42   : > { %v1978_v57 = vpack.c.bf16 %v1977_v56, %v1977_v56 }
 0xd44   : > { %2855 = vmatmul.mubr.msk.bf16.vlgmr.msra.gmra.mrb[28].mxu1 %vm1082_vm1, %v1978_v57 }
 0xd45   : > { %2874 = vmatprep.mubr.msk.bf16.mxu1 %vm3649_vm0, %v3648_v0 }
 0xe17   : > { %v2034_v59 = vpop.f32.mrb[28].mxu1 }
 0xe18   : > { %v2035_v60 = vadd.f32 %v2672_v58, %v2034_v59  ;;  %v2856_v61 = vpop.f32.mrb[29].mxu1 }
 0xe19   : > { %v2037_v62 = vpop.f32.mrb[30].mxu1 }
 0xe1a   : > { %v2857_v63 = vpop.f32.mrb[31].mxu1  ;;  %v2040_v1 = vadd.f32 %v2035_v60, %v4325_v47  ;;  %v3077_v47 = vld [vmem:[%s4682_s6] sm:$0xff]  }
 0xe1b   : > { %2867 = vmatpush3.bf16.msra.mxu1 %v3077_v47 }
 0xe1c   : > { %v2041_v2 = vsel %vm1082_vm1, %v2040_v1, 0.0  ;;  %2868 = vmatprep.subr.bf16.mxu1 %v3648_v0 }
 0xe1d   : > { %2042 = vadd.xlane.f32.xlu0 %v2041_v2 }
 0xe1f   : > { %2869 = vmatpush3.bf16.msra.mxu1 %v3078_v11 }
 0xe20   : > { %2870 = vmatprep.subr.bf16.mxu1 %v3648_v0 }
 0xe23   : > { %2871 = vmatpush3.bf16.msra.mxu1 %v3079_v27 }
 0xe24   : > { %2872 = vmatprep.subr.bf16.mxu1 %v3648_v0  ;;  %v2682_v0 = vld [vmem:[%s4684_s1] ss:$0 sm:$0xff]  ;;  %s3483_s1 = scalar_lea.vmem %s3482_s10, 512 }
 0xe25   : > { %p3485_p13 = scmp.lt.s32.totalorder %s3483_s1, %s3477_s16 }
 0xe27   : > { %2873 = vmatpush3.bf16.msra.mxu1 %v3080_v28  ;;  %p3486_p1 = por %p3485_p13, %p3484_p12 }
 0xe29   : > { %p3487_p3 = pnand %p3486_p1, %p3480_p4 }
 0xeaa   : > { %v2043_v3 = vpop.xlane.xlu0 %2042 }
 0xeab   : > { %v2044_v5 = vmul.f32 0.03125, %v2043_v3 }
 0xead   : > { %v2045_v6 = vsub.f32 %v2040_v1, %v2044_v5 }
 0xeaf   : > { %v2046_v7 = vmul.f32 %v2045_v6, %v2045_v6 }
 0xeb1   : > { %v2047_v8 = vsel %vm1082_vm1, %v2046_v7, 0.0 }
 0xeb2   : > { %2048 = vadd.xlane.f32.xlu1 %v2047_v8 }
 0xf3f   : > { %v2049_v12 = vpop.xlane.xlu1 %2048 }
 0xf40   : > { %v2050_v13 = vmul.f32 0.032258064, %v2049_v12 }
 0xf42   : > { %3101 = vrsqrt.f32 %v2050_v13  ;;  %vm2053_vm7 = vcmp.eq.f32.partialorder %v2050_v13, inf  ;;  %v2056_v16 = vand.u32 2147483648, %v2050_v13  ;;  %vm2055_vm8 = vcmp.eq.f32.partialorder %v2050_v13, 0.0 }
 0xf4c   : > { %v3102_v14 = vpop.eup %3101 }
 0xf4d   : > { %v2052_v15 = vmul.f32 %v3102_v14, %v2050_v13 }
 0xf4f   : > { %v2054_v17 = vsel %vm2053_vm7, %v2050_v13, %v2052_v15 }
 0xf50   : > { %v2057_v18 = vsel %vm2055_vm8, %v2056_v16, %v2054_v17 }
 0xf51   : > { %v2058_v19 = vadd.f32 0.001, %v2057_v18 }
 0xf53   : > { %3103 = vrcp.f32 %v2058_v19 }
 0xf5d   : > { %v3104_v20 = vpop.eup %3103 }
 0xf5e   : > { %v2060_v22 = vmul.f32 %v3104_v20, %v2045_v6 }
 0xf60   : > { %v2067_v24 = vmul.f32 %v2676_v21, %v2060_v22 }
 0xf62   : > { %v2074_v25 = vadd.f32 %v2677_v23, %v2067_v24 }
 0xf64   : > { %v2075_v26 = vpack.c.bf16 %v2074_v25, %v2074_v25 }
 0xf66   : > { %2863 = vmatmul.mubr.msk.bf16.vlgmr.msra.gmra.mrb[32].mxu0 %vm1082_vm1, %v2075_v26 }
0x1039   : > { %v2136_v4 = vpop.f32.mrb[32].mxu0 }
0x103a   : > { %v2137_v30 = vadd.f32 %v2678_v29, %v2136_v4  ;;  %v2864_v31 = vpop.f32.mrb[33].mxu0 }
0x103b   : > { %v2139_v32 = vpop.f32.mrb[34].mxu0 }
0x103c   : > { %v2142_v33 = vmax.f32 %v2137_v30, 0.0  ;;  %v2865_v34 = vpop.f32.mrb[35].mxu0 }
0x103e   : > { %v2143_v35 = vpack.c.bf16 %v2142_v33, %v2142_v33 }
0x1040   : > { %2875 = vmatmul.mubr.msk.bf16.vlgmr.msra.gmra.mrb[32].mxu1 %vm2183_vm9, %v2143_v35 }
0x1113   : > { %v2221_v36 = vpop.f32.mrb[32].mxu1 }
0x1114   : > { %v2222_v37 = vadd.f32 %v2682_v0, %v2221_v36  ;;  %v2876_v38 = vpop.f32.mrb[33].mxu1 }
0x1115   : > { %v2224_v39 = vpop.f32.mrb[34].mxu1 }
0x1116   : > { %v2877_v40 = vpop.f32.mrb[35].mxu1  ;;  %v2227_v41 = vadd.f32 %v2222_v37, %v2074_v25 }
0x1118   : > { %v2230_v42 = vsel %vm1082_vm1, %v2227_v41, 0.0 }
0x1119   : > { %2231 = vadd.xlane.f32.xlu0 %v2230_v42 }
0x11a6   : > { %v2232_v43 = vpop.xlane.xlu0 %2231 }
0x11a7   : > { %v2233_v44 = vmul.f32 0.03125, %v2232_v43 }
0x11a9   : > { %v4419_v45 = vsub.f32 %v2227_v41, %v2233_v44 }
0x11ab   : > { %v2235_v46 = vmul.f32 %v4419_v45, %v4419_v45 }
0x11ad   : > { %v2236_v48 = vsel %vm1082_vm1, %v2235_v46, 0.0 }
0x11ae   : > { %2237 = vadd.xlane.f32.xlu0 %v2236_v48 }
0x11af   : > { %3490 = shalt.err (!%p3487_p3)
}
0x11b0   : > { %s3491_s29 = scalar_lea.hbm %s4431_s30, 256  ;;  %s3495_s24 = scalar_lea.hbm %s4685_s2, 512 }
0x11b1   : > { %p3492_p2 = scmp.ne.s32.totalorder %s4431_s30, %s3491_s29  ;;  %p3496_p5 = scmp.lt.u32.totalorder %s4431_s30, %s4685_s2 }
0x11b2   : > { %p3497_p9 = scmp.lt.u32.totalorder %s3495_s24, %s3491_s29  ;;  %p3499_p7 = scmp.lt.u32.totalorder %s3491_s29, %s4431_s30 }
0x11b3   : > { %p3493_p6 = pnand %p3492_p2, %p4686_p11 }
0x11b4   : > { %p3498_p0 = por %p3497_p9, %p3496_p5 }
0x11b5   : > { %p3494_p10 = pneg %p3493_p6 }
0x11b6   : > { %p3500_p8 = por %p3499_p7, %p3498_p0 }
0x11b8   : > { %p3501_p4 = pnand %p3500_p8, %p3494_p10 }
0x11ba   : > { %3504 = shalt.err (!%p3501_p4)
}
0x11bb   : > { %s3653_s16 = smov 128   ;;  %s3654_s10 = smov 256  }
0x11bc   : > { %s3655_s1 = smov 8   ;;  %s4687_s25 = sld [smem:[#allocation61_spill]] }
0x11bd   : > { %2927 = dma.vmem_to_hbm [thread:$0]  (%p4686_p11), %s4434_s18, 256, %s4431_s30, %s4438_s17, %s3653_s16, %s3654_s10, %s3655_s1  }
0x11be   : > { %s2316_s5 = sshll.u32 %s4365_s21, 4  ;;  %s3656_s2 = smov [#allocation26]   ;;  %s4472_s5 = int_to_ptr.vmem [resolvable:$true] %s2316_s5 }
0x11bf   : > { %s3505_s26 = scalar_lea.vmem %s4472_s5, 256  ;;  %s3509_s4 = sshll.u32 %s3656_s2, 4  ;;  %s3510_s4 = int_to_ptr.vmem [resolvable:$false] %s3509_s4 }
0x11c0   : > { %p3506_p12 = scmp.ne.s32.totalorder %s4472_s5, %s3505_s26  ;;  %s3511_s30 = scalar_lea.vmem %s3510_s4, 512 }
0x11c1   : > { %p3512_p3 = scmp.lt.s32.totalorder %s4472_s5, %s3510_s4  ;;  %p3513_p2 = scmp.lt.s32.totalorder %s3511_s30, %s3505_s26 }
0x11c2   : > { %s4469_s24 = scalar_lea.hbm %s4687_s25, %s4425_s14  ;;  %p3507_p13 = pnand %p3506_p12, %p4686_p11 }
0x11c3   : > { %p3514_p6 = por %p3513_p2, %p3512_p3 }
0x11c4   : > { %p3508_p1 = pneg %p3507_p13 }
0x11c6   : > { %p3515_p10 = pnand %p3514_p6, %p3508_p1 }
0x11c8   : > { %3518 = shalt.err (!%p3515_p10)
}
0x11c9   : > { %s3519_s21 = scalar_lea.hbm %s4469_s24, 256  ;;  %s3523_s2 = scalar_lea.hbm %s4687_s25, 512 }
0x11ca   : > { %p3520_p5 = scmp.ne.s32.totalorder %s4469_s24, %s3519_s21  ;;  %p3524_p7 = scmp.lt.u32.totalorder %s4469_s24, %s4687_s25 }
0x11cb   : > { %p3525_p8 = scmp.lt.u32.totalorder %s3523_s2, %s3519_s21  ;;  %p3527_p12 = scmp.lt.u32.totalorder %s3519_s21, %s4469_s24 }
0x11cc   : > { %p3521_p9 = pnand %p3520_p5, %p4686_p11 }
0x11cd   : > { %p3526_p4 = por %p3525_p8, %p3524_p7 }
0x11ce   : > { %p3522_p0 = pneg %p3521_p9 }
0x11cf   : > { %p3528_p13 = por %p3527_p12, %p3526_p4 }
0x11d1   : > { %p3529_p1 = pnand %p3528_p13, %p3522_p0 }
0x11d3   : > { %3532 = shalt.err (!%p3529_p1)
}
0x11d4   : > { %2928 = dma.vmem_to_hbm [thread:$0]  (%p4686_p11), %s4472_s5, 256, %s4469_s24, %s4438_s17, %s3653_s16, %s3654_s10, %s3655_s1  }
0x11d5   : > { %s2633_s26 = sshll.u32 %s4176_s15, 3  ;;  %s4688_s17 = sld [smem:[#allocation57_spill]] }
0x11d6   : > { %s4689_s1 = sld [smem:[#allocation58_spill]]  ;;  %s1020_s24 = scalar_lea.vmem [#allocation23], %s2633_s26 }
0x11d7   : > { %s2289_s5 = sshll.u32 %s1020_s24, 4  ;;  %s4690_s2 = sld [smem:[#allocation59_spill]]  ;;  %s4513_s5 = int_to_ptr.vmem [resolvable:$true] %s2289_s5 }
0x11d8   : > { %s2266_s4 = scalar_lea.sflag [#allocation4], %s4176_s15  ;;  %s3533_s30 = scalar_lea.vmem %s4513_s5, 128 }
0x11d9   : > { %p3534_p3 = scmp.ne.s32.totalorder %s4513_s5, %s3533_s30  ;;  %s3657_s26 = smov [#allocation23]  }
0x11da   : > { %s3537_s21 = sshll.u32 %s3657_s26, 4  ;;  %s3538_s21 = int_to_ptr.vmem [resolvable:$false] %s3537_s21 }
0x11db   : > { %v2688_v58 = vld [vmem:[%s4688_s17] ss:$0 sm:$0xff]  ;;  %p3535_p2 = pnand %p3534_p3, %p4686_p11  ;;  %s3539_s17 = scalar_lea.vmem %s3538_s21, 256 }
0x11dc   : > { %v2689_v60 = vld [vmem:[%s4689_s1] ss:$0 sm:$0xff]  ;;  %p3540_p10 = scmp.lt.s32.totalorder %s4513_s5, %s3538_s21  ;;  %p3541_p5 = scmp.lt.s32.totalorder %s3539_s17, %s3533_s30 }
0x11dd   : > { %s4511_s29 = scalar_lea.hbm %s4690_s2, %s4425_s14  ;;  %p3536_p6 = pneg %p3535_p2 }
0x11de   : > { %p3542_p9 = por %p3541_p5, %p3540_p10 }
0x11e0   : > { %p3543_p0 = pnand %p3542_p9, %p3536_p6 }
0x123b   : > { %v2238_v49 = vpop.xlane.xlu0 %2237 }
0x123c   : > { %v2239_v50 = vmul.f32 0.032258064, %v2238_v49 }
0x123e   : > { %3105 = vrsqrt.f32 %v2239_v50  ;;  %vm2242_vm10 = vcmp.eq.f32.partialorder %v2239_v50, inf  ;;  %v2245_v53 = vand.u32 2147483648, %v2239_v50  ;;  %vm2244_vm11 = vcmp.eq.f32.partialorder %v2239_v50, 0.0 }
0x1248   : > { %v3106_v51 = vpop.eup %3105 }
0x1249   : > { %v2241_v52 = vmul.f32 %v3106_v51, %v2239_v50 }
0x124b   : > { %v2243_v54 = vsel %vm2242_vm10, %v2239_v50, %v2241_v52 }
0x124c   : > { %v2246_v55 = vsel %vm2244_vm11, %v2245_v53, %v2243_v54 }
0x124d   : > { %v2247_v56 = vadd.f32 0.001, %v2246_v55 }
0x124f   : > { %3107 = vrcp.f32 %v2247_v56 }
0x1259   : > { %v3108_v57 = vpop.eup %3107 }
0x125a   : > { %v2249_v59 = vmul.f32 %v3108_v57, %v4419_v45 }
0x125c   : > { %v2256_v61 = vmul.f32 %v2688_v58, %v2249_v59 }
0x125e   : > { %v2263_v62 = vadd.f32 %v2689_v60, %v2256_v61 }
0x1260   : > { %2264 = vst.msk [vmem:[%s1020_s24] sm:$0xff] %vm1082_vm1, %v2263_v62 }
0x1261   : > { %3546 = shalt.err (!%p3543_p0)
}
0x1262   : > { %s3547_s15 = scalar_lea.hbm %s4511_s29, 128  ;;  %s3551_s10 = scalar_lea.hbm %s4690_s2, 256 }
0x1263   : > { %p3548_p7 = scmp.ne.s32.totalorder %s4511_s29, %s3547_s15  ;;  %p3552_p12 = scmp.lt.u32.totalorder %s4511_s29, %s4690_s2 }
0x1264   : > { %p3553_p13 = scmp.lt.u32.totalorder %s3551_s10, %s3547_s15  ;;  %p3555_p3 = scmp.lt.u32.totalorder %s3547_s15, %s4511_s29 }
0x1265   : > { %p3549_p8 = pnand %p3548_p7, %p4686_p11 }
0x1266   : > { %p3554_p1 = por %p3553_p13, %p3552_p12 }
0x1267   : > { %p3550_p4 = pneg %p3549_p8 }
0x1268   : > { %p3556_p2 = por %p3555_p3, %p3554_p1 }
0x126a   : > { %p3557_p6 = pnand %p3556_p2, %p3550_p4 }
0x126c   : > { %3560 = shalt.err (!%p3557_p6)
}
0x126d   : > { %2926 = dma.vmem_to_hbm [thread:$0]  (%p4686_p11), %s4513_s5, 128, %s4511_s29, %s2266_s4  }
0x126e PF: > { %s2331_s18 = sand.u32 1, %s3619_s27   ;;  %p4691_p10 = scmp.ne.s32.totalorder %s4660_s19, 0 }
0x126f   : > { %p4692_p5 = scmp.ge.s32.totalorder %s3631_s28, 2  ;;  %s2332_s0 = scalar_lea.sflag [#allocation4], %s2331_s18 }
0x1271   : > { %p2974_p9 = pnand %p4692_p5, %p4691_p10 }
0x1273   : > { %3610 = dma.done.wait (!%p2974_p9), %s2332_s0, 128  }
0x1274   : > { %3612 = vsyncadd (!%p2974_p9), %s2332_s0, 4294967168  ;;  %s4693_s30 = sadd.s32 4294967294, %s3631_s28  }
0x1275   : > { %s2340_s26 = sand.u32 1, %s4693_s30  }
0x1276   : > { %s2341_s21 = scalar_lea.sflag [#allocation25], %s2340_s26 }
0x1277   : > { %3614 = dma.done.wait (!%p2974_p9), %s2341_s21, 512  }
0x1278   : > { %3616 = vsyncadd (!%p2974_p9), %s2341_s21, 4294966784  ;;  %p51_p11 = scmp.ge.s32.totalorder %s4075_s9, 4   ;;  %s4694_s27 = smov %s3623_s3 }
0x1279   : > { %s4695_s3 = smov %s3627_s7  ;;  %s4696_s7 = smov %s4087_s23 }
0x127a   : > { %s4697_s28 = smov %s4075_s9  ;;  %53 = sbr.rel (!%p51_p11) target bundleno = 40 (0x28), region = 258 }
0x1281   :  { %2355 = vsyncpa [#allocation3], 1 }
0x1282   :  { %2357 = vsyncpa [#allocation3 + $0x1], 1 }
0x1283   :  { %2358 = vsyncpa [#allocation6], 1 }
0x1284   :  { %2360 = vsyncpa [#allocation6 + $0x1], 1 }
0x1285   :  { %2361 = vsyncpa [#allocation9], 1 }
0x1286   :  { %2362 = vsyncpa [#allocation12], 1 }
0x1287   :  { %2363 = vsyncpa [#allocation15], 1 }
0x1288   :  { %2364 = vsyncpa [#allocation18], 1 }
0x1289   :  { %2365 = vsyncpa [#allocation21], 1 }
0x128a   :  { %2366 = vsyncpa [#allocation4], 1 }
0x128b   :  { %2368 = vsyncpa [#allocation4 + $0x1], 1 }
0x128c   :  { %2369 = vsyncpa [#allocation25], 1 }
0x128d   :  { %2371 = vsyncpa [#allocation25 + $0x1], 1 }

</bundles_post_ra>
